<compile_context>
chip_gen: v7x
topology: tpu7x:2x2x1
jax: 0.10.0
libtpu: 0.0.40
codegen_flags: <defaults>
</compile_context>

<pallas_src>
import jax
import jax.numpy as jnp
from jax import lax
from jax.experimental import pallas as pl
from jax.experimental.pallas import tpu as pltpu

LANE = 128       # lane width: channel / edge dims padded to multiples of this
SUB = 8          # f32 sublane granularity: dst-row counts padded to this
SRC_TILE = 128   # src-reduction tile for the layer-0 message passing


# ----------------------------------------------------------------------------
# small padding helpers (XLA glue)
# ----------------------------------------------------------------------------
def _round_up(n, m):
    return ((n + m - 1) // m) * m


def _pad2(x, rows, cols, value=0.0):
    return jnp.pad(x, ((0, rows - x.shape[0]), (0, cols - x.shape[1])),
                   constant_values=value)


def _pad_last(x, size):
    cfg = [(0, 0)] * (x.ndim - 1) + [(0, size - x.shape[-1])]
    return jnp.pad(x, cfg)


# ----------------------------------------------------------------------------
# fused kernel: projection -> tiled layer-0 conv -> remaining convs -> scorer
# ----------------------------------------------------------------------------
def _make_kernel(n_layers, nd_pad, kt, e_pad, sel_rows):
    nd0 = nd_pad[0]
    nd_last = nd_pad[-1]

    def kernel(*refs):
        # -------- unpack refs -------------------------------------------------
        feat_ref, emb_ref, pw_ref, pb_ref = refs[0:4]
        off = 4
        layer_refs = []
        for _ in range(n_layers):
            layer_refs.append(refs[off:off + 6])   # adj, ws_inv, Q, bq, W12, bw
            off += 6
        sel_ref, bpos_ref, bneg_ref = refs[off:off + 3]
        out_ref = refs[off + 3]
        nmsg_ref, h0dst_ref = refs[off + 4:off + 6]

        adj0_ref, ws0_ref, q0_ref, bq0_ref, w12_0_ref, bw0_ref = layer_refs[0]
        k = pl.program_id(0)

        # -------- LinearProjector on this src tile (bf16 MXU, f32 acc) --------
        h0_tile = (jnp.dot(feat_ref[...], pw_ref[...],
                           preferred_element_type=jnp.float32)
                   + pb_ref[...] + emb_ref[...])               # (SRC_TILE, HPAD)

        @pl.when(k == 0)
        def _():
            nmsg_ref[...] = jnp.zeros_like(nmsg_ref)
            # dst nodes are a prefix of the src nodes and live in tile 0:
            # snapshot their projection (residual + layer-0 self path) so the
            # full h0 tile can die after this grid step.
            h0dst_ref[...] = h0_tile[:nd0]

        # -------- layer-0 neighbour transform + partial message accumulation --
        nsrc = jnp.maximum(
            jnp.dot(h0_tile.astype(jnp.bfloat16), q0_ref[...],
                    preferred_element_type=jnp.float32) + bq0_ref[...], 0.0)
        nmsg_ref[...] += jnp.dot(adj0_ref[...], nsrc.astype(jnp.bfloat16),
                                 preferred_element_type=jnp.float32)

        # -------- finalize on the last reduction step --------------------------
        @pl.when(k == kt - 1)
        def _():
            h0_dst = h0dst_ref[...]                            # (nd0, HPAD) f32

            def finish_layer(nmsg, h_dst, ws_ref, w12_ref, bw_ref):
                # z = relu([n * ws_inv ; h_dst] @ W12 + bw)   (single K=2*HPAD matmul)
                zin = jnp.concatenate([nmsg * ws_ref[...], h_dst], axis=1)
                z = jnp.maximum(
                    jnp.dot(zin.astype(jnp.bfloat16), w12_ref[...],
                            preferred_element_type=jnp.float32) + bw_ref[...],
                    0.0)
                # row-wise L2 normalize via EUP rsqrt (zero rows stay zero)
                ssq = jnp.sum(z * z, axis=1, keepdims=True)
                return z * lax.rsqrt(jnp.maximum(ssq, 1e-24))

            h = finish_layer(nmsg_ref[...], h0_dst, ws0_ref, w12_0_ref, bw0_ref)

            # remaining WeightedSAGEConv layers: small, fully VMEM-resident
            for l in range(1, n_layers):
                adj_ref, ws_ref, q_ref, bq_ref, w12_ref, bw_ref = layer_refs[l]
                nsrc_l = jnp.maximum(
                    jnp.dot(h.astype(jnp.bfloat16), q_ref[...],
                            preferred_element_type=jnp.float32) + bq_ref[...],
                    0.0)
                nmsg_l = jnp.dot(adj_ref[...], nsrc_l.astype(jnp.bfloat16),
                                 preferred_element_type=jnp.float32)
                # slice f32 h (tile-aligned) before any bf16 cast
                h = finish_layer(nmsg_l, h[:nd_pad[l]], ws_ref, w12_ref, bw_ref)

            # get_repr residual: h_item_dst == projection of the dst prefix
            h_item = h + h0_dst[:nd_last]                      # (nd_last, HPAD)

            # -------- ItemToItemScorer + margin loss (lane-dense) --------------
            # zero-pad the seed rows to sel_rows, transpose (fully tile-aligned
            # f32 transpose), then ONE stacked bf16 selector matmul.
            pad_rows = sel_rows - h_item.shape[0]
            if pad_rows:
                h_item = jnp.concatenate(
                    [h_item,
                     jnp.zeros((pad_rows, h_item.shape[1]), jnp.float32)],
                    axis=0)                                    # (sel_rows, HPAD)
            h_item_t = jnp.transpose(h_item).astype(jnp.bfloat16)  # (HPAD, sel_rows)
            hsel = jnp.dot(h_item_t, sel_ref[...],
                           preferred_element_type=jnp.float32)     # (HPAD, 4*e_pad)

            hps = hsel[:, 0 * e_pad:1 * e_pad]
            hpd = hsel[:, 1 * e_pad:2 * e_pad]
            hns = hsel[:, 2 * e_pad:3 * e_pad]
            hnd = hsel[:, 3 * e_pad:4 * e_pad]
            pos = jnp.sum(hps * hpd, axis=0, keepdims=True) + bpos_ref[...]
            neg = jnp.sum(hns * hnd, axis=0, keepdims=True) + bneg_ref[...]
            out_ref[...] = jnp.maximum(neg - pos + 1.0, 0.0)   # (1, e_pad)

    return kernel


# ----------------------------------------------------------------------------
# parameters (natural PyTorch shapes) + one-time padding / casting
# ----------------------------------------------------------------------------
def init_params(key, num_nodes, feat_dim, hidden, n_layers):
    ks = jax.random.split(key, 2 + 3 * n_layers)
    s = 0.1
    params = {
        "id_emb": s * jax.random.normal(ks[0], (num_nodes, hidden), jnp.float32),
        "proj_w": s * jax.random.normal(ks[1], (feat_dim, hidden), jnp.float32),
        "proj_b": jnp.zeros((1, hidden), jnp.float32),
        # ItemToItemScorer: nn.Parameter(torch.zeros(n_nodes))
        "scorer_bias": jnp.zeros((num_nodes,), jnp.float32),
        "layers": [],
    }
    for l in range(n_layers):
        k = ks[2 + 3 * l: 2 + 3 * (l + 1)]
        params["layers"].append({
            "Q": s * jax.random.normal(k[0], (hidden, hidden), jnp.float32),
            "bq": jnp.zeros((1, hidden), jnp.float32),
            "W1": s * jax.random.normal(k[1], (hidden, hidden), jnp.float32),
            "W2": s * jax.random.normal(k[2], (hidden, hidden), jnp.float32),
            "bw": jnp.zeros((1, hidden), jnp.float32),
        })
    return params


def prepare_params(params):
    """Pad channel dims to 128 lanes, fuse W1/W2, cast MXU operands to bf16."""
    feat_dim, hidden = params["proj_w"].shape
    fpad, hpad = _round_up(feat_dim, LANE), _round_up(hidden, LANE)
    prepped = {
        "feat_pad": fpad, "hidden_pad": hpad,
        "proj_w": _pad2(params["proj_w"], fpad, hpad).astype(jnp.bfloat16),
        "proj_b": _pad_last(params["proj_b"], hpad),          # f32 (post-acc add)
        "id_emb": _pad_last(params["id_emb"], hpad),          # f32 (post-acc add)
        "scorer_bias": params["scorer_bias"],
        "layers": [],
    }
    for lp in params["layers"]:
        w12 = jnp.concatenate([_pad2(lp["W1"], hpad, hpad),
                               _pad2(lp["W2"], hpad, hpad)], axis=0)
        prepped["layers"].append({
            "Q": _pad2(lp["Q"], hpad, hpad).astype(jnp.bfloat16),
            "bq": _pad_last(lp["bq"], hpad),
            "W12": w12.astype(jnp.bfloat16),                   # (2*hpad, hpad)
            "bw": _pad_last(lp["bw"], hpad),
        })
    return prepped


# ----------------------------------------------------------------------------
# forward: one grid-tiled pallas_call
# ----------------------------------------------------------------------------
def pinsage_forward(params, feats, nids, block_adjs, block_n_dst,
                    pos_src, pos_dst, neg_src, neg_dst, *, src_tile=SRC_TILE):
    """Returns clamp(neg_score - pos_score + 1, min=0), shape (E,)."""
    n_layers = len(block_adjs)
    n_src0 = int(block_adjs[0].shape[1])
    n_seed = int(block_n_dst[-1])
    n_edges = int(pos_src.shape[0])
    fpad, hpad = params["feat_pad"], params["hidden_pad"]

    nd_pad = [_round_up(int(d), SUB) for d in block_n_dst]
    src0_pad = _round_up(n_src0, src_tile)
    kt = src0_pad // src_tile
    e_pad = _round_up(n_edges, LANE)
    sel_rows = _round_up(nd_pad[-1], LANE)
    assert int(block_n_dst[0]) <= src_tile, \
        "layer-0 dst prefix must fit inside the first src tile"

    # --- JAX glue: gathers, padding, bf16 casts, exact-f32 edge-weight sums ---
    feat_g = _pad2(feats[nids], src0_pad, fpad).astype(jnp.bfloat16)
    emb_g = _pad2(params["id_emb"][nids], src0_pad, hpad)      # f32

    adj_in, ws_in = [], []
    prev_cols = src0_pad
    for l, adj in enumerate(block_adjs):
        ws = jnp.maximum(jnp.sum(adj, axis=1, keepdims=True), 1.0)   # exact f32
        ws_inv = jnp.pad(1.0 / ws, ((0, nd_pad[l] - adj.shape[0]), (0, 0)),
                         constant_values=1.0)
        adj_in.append(_pad2(adj, nd_pad[l], prev_cols).astype(jnp.bfloat16))
        ws_in.append(ws_inv)
        prev_cols = nd_pad[l]

    # stacked transposed one-hot selectors (bf16 exact for 0/1), lane-padded
    def sel_t(idx):
        oh = jax.nn.one_hot(idx, sel_rows, dtype=jnp.float32).T   # (sel_rows, E)
        return _pad_last(oh, e_pad)
    sel_stack = jnp.concatenate(
        [sel_t(pos_src), sel_t(pos_dst), sel_t(neg_src), sel_t(neg_dst)],
        axis=1).astype(jnp.bfloat16)                              # (sel_rows, 4*e_pad)

    bias = params["scorer_bias"]
    seed_nids = nids[:n_seed]
    b_pos = _pad_last((bias[seed_nids[pos_src]]
                       + bias[seed_nids[pos_dst]])[None, :], e_pad)
    b_neg = _pad_last((bias[seed_nids[neg_src]]
                       + bias[seed_nids[neg_dst]])[None, :], e_pad)

    # --- inputs + BlockSpecs ---------------------------------------------------
    inputs = [feat_g, emb_g, params["proj_w"], params["proj_b"]]
    in_specs = [
        pl.BlockSpec((src_tile, fpad), lambda k: (k, 0)),    # feat tile
        pl.BlockSpec((src_tile, hpad), lambda k: (k, 0)),    # id_emb tile
        pl.BlockSpec((fpad, hpad), lambda k: (0, 0)),        # proj W (resident)
        pl.BlockSpec((1, hpad), lambda k: (0, 0)),           # proj b
    ]
    for l, lp in enumerate(params["layers"]):
        inputs += [adj_in[l], ws_in[l], lp["Q"], lp["bq"], lp["W12"], lp["bw"]]
        if l == 0:
            adj_spec = pl.BlockSpec((nd_pad[0], src_tile), lambda k: (0, k))
        else:
            adj_spec = pl.BlockSpec((nd_pad[l], nd_pad[l - 1]), lambda k: (0, 0))
        in_specs += [
            adj_spec,
            pl.BlockSpec((nd_pad[l], 1), lambda k: (0, 0)),
            pl.BlockSpec((hpad, hpad), lambda k: (0, 0)),
            pl.BlockSpec((1, hpad), lambda k: (0, 0)),
            pl.BlockSpec((2 * hpad, hpad), lambda k: (0, 0)),
            pl.BlockSpec((1, hpad), lambda k: (0, 0)),
        ]
    inputs += [sel_stack, b_pos, b_neg]
    in_specs += [
        pl.BlockSpec((sel_rows, 4 * e_pad), lambda k: (0, 0)),
        pl.BlockSpec((1, e_pad), lambda k: (0, 0)),
        pl.BlockSpec((1, e_pad), lambda k: (0, 0)),
    ]

    scratch = [pltpu.VMEM((nd_pad[0], hpad), jnp.float32),     # nmsg accumulator
               pltpu.VMEM((nd_pad[0], hpad), jnp.float32)]     # h0 dst prefix

    # scoped VMEM limit sized from the actual buffers (2x for double buffering,
    # 2x headroom), capped safely below v7x's 64 MiB physical VMEM.
    est = sum(int(a.size) * a.dtype.itemsize for a in inputs)
    est = 2 * est + 2 * e_pad * 4 + 2 * nd_pad[0] * hpad * 4
    vmem_limit = int(min(max(2 * est, 4 << 20), 32 << 20))

    kernel = _make_kernel(n_layers, tuple(nd_pad), kt, e_pad, sel_rows)
    out = pl.pallas_call(
        kernel,
        out_shape=jax.ShapeDtypeStruct((1, e_pad), jnp.float32),
        grid_spec=pltpu.PrefetchScalarGridSpec(
            num_scalar_prefetch=0,
            grid=(kt,),
            in_specs=in_specs,
            out_specs=pl.BlockSpec((1, e_pad), lambda k: (0, 0)),
            scratch_shapes=scratch),
        compiler_params=pltpu.CompilerParams(
            dimension_semantics=("arbitrary",),   # src axis is a reduction
            vmem_limit_bytes=vmem_limit),
    )(*inputs)
    return out[0, :n_edges]


# ----------------------------------------------------------------------------
if __name__ == "__main__":
    key = jax.random.PRNGKey(0)
    num_nodes, feat_dim, hidden, n_layers = 512, 16, 32, 2
    n_src = [256, 16]   # block srcdata sizes (layer-0 src spans 2 grid tiles)
    n_dst = [16, 8]     # block dstdata sizes (dst nodes = prefix of src nodes)
    n_edges = 8

    k_feat, k_nid, k_a0, k_a1, k_neg, k_param = jax.random.split(key, 6)

    feats = jax.random.normal(k_feat, (num_nodes, feat_dim), jnp.float32)
    nids = jax.random.permutation(k_nid, num_nodes)[: n_src[0]]  # sampled ids

    block_adjs = [
        jax.random.uniform(k_a0, (n_dst[0], n_src[0]), jnp.float32),
        jax.random.uniform(k_a1, (n_dst[1], n_src[1]), jnp.float32),
    ]

    pos_src = jnp.arange(n_edges, dtype=jnp.int32)
    pos_dst = (pos_src + 1) % n_edges
    neg_src = jnp.arange(n_edges, dtype=jnp.int32)
    neg_dst = jax.random.permutation(k_neg, n_edges).astype(jnp.int32)

    params = prepare_params(
        init_params(k_param, num_nodes, feat_dim, hidden, n_layers))

    loss = pinsage_forward(params, feats, nids, block_adjs, n_dst,
                           pos_src, pos_dst, neg_src, neg_dst)
    jax.block_until_ready(loss)
    assert loss.shape == (n_edges,) and loss.dtype == jnp.float32
    assert bool(jnp.all(jnp.isfinite(loss)))
    print("KERNEL_OK")
</pallas_src>

<mosaic_0001>
module attributes {stable_mosaic.version = 11 : i64} {
  func.func @kernel(%arg0: i32, %arg1: memref<128x128xbf16, #tpu.memory_space<vmem>>, %arg2: memref<128x128xf32, #tpu.memory_space<vmem>>, %arg3: memref<128x128xbf16, #tpu.memory_space<vmem>>, %arg4: memref<1x128xf32, #tpu.memory_space<vmem>>, %arg5: memref<16x128xbf16, #tpu.memory_space<vmem>>, %arg6: memref<16x1xf32, #tpu.memory_space<vmem>>, %arg7: memref<128x128xbf16, #tpu.memory_space<vmem>>, %arg8: memref<1x128xf32, #tpu.memory_space<vmem>>, %arg9: memref<256x128xbf16, #tpu.memory_space<vmem>>, %arg10: memref<1x128xf32, #tpu.memory_space<vmem>>, %arg11: memref<8x16xbf16, #tpu.memory_space<vmem>>, %arg12: memref<8x1xf32, #tpu.memory_space<vmem>>, %arg13: memref<128x128xbf16, #tpu.memory_space<vmem>>, %arg14: memref<1x128xf32, #tpu.memory_space<vmem>>, %arg15: memref<256x128xbf16, #tpu.memory_space<vmem>>, %arg16: memref<1x128xf32, #tpu.memory_space<vmem>>, %arg17: memref<128x512xbf16, #tpu.memory_space<vmem>>, %arg18: memref<1x128xf32, #tpu.memory_space<vmem>>, %arg19: memref<1x128xf32, #tpu.memory_space<vmem>>, %arg20: memref<1x128xf32, #tpu.memory_space<vmem>>, %arg21: memref<16x128xf32, #tpu.memory_space<vmem>>, %arg22: memref<16x128xf32, #tpu.memory_space<vmem>>) attributes {dimension_semantics = [#tpu.dimension_semantics<arbitrary>], iteration_bounds = array<i64: 2>, scalar_prefetch = 0 : i64, scratch_operands = 2 : i64, tpu.core_type = #tpu.core_type<tc>, window_params = [{transform_indices = @transform_0, window_bounds = array<i64: 128, 128>}, {transform_indices = @transform_1, window_bounds = array<i64: 128, 128>}, {pipeline_mode = #tpu.pipeline_mode<synchronous>, transform_indices = @transform_2, window_bounds = array<i64: 128, 128>}, {pipeline_mode = #tpu.pipeline_mode<synchronous>, transform_indices = @transform_3, window_bounds = array<i64: 1, 128>}, {transform_indices = @transform_4, window_bounds = array<i64: 16, 128>}, {pipeline_mode = #tpu.pipeline_mode<synchronous>, transform_indices = @transform_5, window_bounds = array<i64: 16, 1>}, {pipeline_mode = #tpu.pipeline_mode<synchronous>, transform_indices = @transform_6, window_bounds = array<i64: 128, 128>}, {pipeline_mode = #tpu.pipeline_mode<synchronous>, transform_indices = @transform_7, window_bounds = array<i64: 1, 128>}, {pipeline_mode = #tpu.pipeline_mode<synchronous>, transform_indices = @transform_8, window_bounds = array<i64: 256, 128>}, {pipeline_mode = #tpu.pipeline_mode<synchronous>, transform_indices = @transform_9, window_bounds = array<i64: 1, 128>}, {pipeline_mode = #tpu.pipeline_mode<synchronous>, transform_indices = @transform_10, window_bounds = array<i64: 8, 16>}, {pipeline_mode = #tpu.pipeline_mode<synchronous>, transform_indices = @transform_11, window_bounds = array<i64: 8, 1>}, {pipeline_mode = #tpu.pipeline_mode<synchronous>, transform_indices = @transform_12, window_bounds = array<i64: 128, 128>}, {pipeline_mode = #tpu.pipeline_mode<synchronous>, transform_indices = @transform_13, window_bounds = array<i64: 1, 128>}, {pipeline_mode = #tpu.pipeline_mode<synchronous>, transform_indices = @transform_14, window_bounds = array<i64: 256, 128>}, {pipeline_mode = #tpu.pipeline_mode<synchronous>, transform_indices = @transform_15, window_bounds = array<i64: 1, 128>}, {pipeline_mode = #tpu.pipeline_mode<synchronous>, transform_indices = @transform_16, window_bounds = array<i64: 128, 512>}, {pipeline_mode = #tpu.pipeline_mode<synchronous>, transform_indices = @transform_17, window_bounds = array<i64: 1, 128>}, {pipeline_mode = #tpu.pipeline_mode<synchronous>, transform_indices = @transform_18, window_bounds = array<i64: 1, 128>}, {pipeline_mode = #tpu.pipeline_mode<synchronous>, transform_indices = @transform_19, window_bounds = array<i64: 1, 128>}]} {
    %c0 = arith.constant 0 : index
    %c0_0 = arith.constant 0 : index
    %0 = vector.load %arg1[%c0, %c0_0] : memref<128x128xbf16, #tpu.memory_space<vmem>>, vector<128x128xbf16>
    %c0_1 = arith.constant 0 : index
    %c0_2 = arith.constant 0 : index
    %1 = vector.load %arg3[%c0_1, %c0_2] : memref<128x128xbf16, #tpu.memory_space<vmem>>, vector<128x128xbf16>
    %cst = arith.constant dense<0.000000e+00> : vector<128x128xf32>
    %2 = tpu.matmul %0, %1, %cst {dimension_numbers = #tpu.dot_dimension_numbers<[1], [0], [0], [1], [0, 0, 1, 1], [], []>} : vector<128x128xbf16>, vector<128x128xbf16>, vector<128x128xf32> -> vector<128x128xf32>
    %c0_3 = arith.constant 0 : index
    %c0_4 = arith.constant 0 : index
    %3 = vector.load %arg4[%c0_3, %c0_4] : memref<1x128xf32, #tpu.memory_space<vmem>>, vector<1x128xf32>
    %4 = vector.broadcast %3 : vector<1x128xf32> to vector<128x128xf32>
    %5 = arith.addf %2, %4 : vector<128x128xf32>
    %c0_5 = arith.constant 0 : index
    %c0_6 = arith.constant 0 : index
    %6 = vector.load %arg2[%c0_5, %c0_6] : memref<128x128xf32, #tpu.memory_space<vmem>>, vector<128x128xf32>
    %7 = arith.addf %5, %6 : vector<128x128xf32>
    %c0_i32 = arith.constant 0 : i32
    %8 = arith.cmpi eq, %arg0, %c0_i32 : i32
    %9 = arith.extui %8 : i1 to i32
    %c0_i32_7 = arith.constant 0 : i32
    %10 = arith.cmpi ne, %9, %c0_i32_7 : i32
    scf.if %10 {
      %cst_22 = arith.constant 0.000000e+00 : f32
      %28 = vector.broadcast %cst_22 : f32 to vector<16x128xf32>
      %c0_23 = arith.constant 0 : index
      %c0_24 = arith.constant 0 : index
      %29 = vector.load %arg21[%c0_23, %c0_24] : memref<16x128xf32, #tpu.memory_space<vmem>>, vector<16x128xf32>
      tpu.vector_store %arg21[%c0_23, %c0_24], %28 {strides = array<i32>} : memref<16x128xf32, #tpu.memory_space<vmem>>, vector<16x128xf32>,
      %30 = vector.extract_strided_slice %7 {offsets = [0, 0], sizes = [16, 128], strides = [1, 1]} : vector<128x128xf32> to vector<16x128xf32>
      %c0_25 = arith.constant 0 : index
      %c0_26 = arith.constant 0 : index
      %31 = vector.load %arg22[%c0_25, %c0_26] : memref<16x128xf32, #tpu.memory_space<vmem>>, vector<16x128xf32>
      tpu.vector_store %arg22[%c0_25, %c0_26], %30 {strides = array<i32>} : memref<16x128xf32, #tpu.memory_space<vmem>>, vector<16x128xf32>,
    } else {
    }
    %11 = arith.truncf %7 : vector<128x128xf32> to vector<128x128xbf16>
    %c0_8 = arith.constant 0 : index
    %c0_9 = arith.constant 0 : index
    %12 = vector.load %arg7[%c0_8, %c0_9] : memref<128x128xbf16, #tpu.memory_space<vmem>>, vector<128x128xbf16>
    %cst_10 = arith.constant dense<0.000000e+00> : vector<128x128xf32>
    %13 = tpu.matmul %11, %12, %cst_10 {dimension_numbers = #tpu.dot_dimension_numbers<[1], [0], [0], [1], [0, 0, 1, 1], [], []>} : vector<128x128xbf16>, vector<128x128xbf16>, vector<128x128xf32> -> vector<128x128xf32>
    %c0_11 = arith.constant 0 : index
    %c0_12 = arith.constant 0 : index
    %14 = vector.load %arg8[%c0_11, %c0_12] : memref<1x128xf32, #tpu.memory_space<vmem>>, vector<1x128xf32>
    %15 = vector.broadcast %14 : vector<1x128xf32> to vector<128x128xf32>
    %16 = arith.addf %13, %15 : vector<128x128xf32>
    %cst_13 = arith.constant 0.000000e+00 : f32
    %17 = vector.broadcast %cst_13 : f32 to vector<128x128xf32>
    %18 = arith.maximumf %16, %17 : vector<128x128xf32>
    %c0_14 = arith.constant 0 : index
    %c0_15 = arith.constant 0 : index
    %19 = vector.load %arg21[%c0_14, %c0_15] : memref<16x128xf32, #tpu.memory_space<vmem>>, vector<16x128xf32>
    %c0_16 = arith.constant 0 : index
    %c0_17 = arith.constant 0 : index
    %20 = vector.load %arg5[%c0_16, %c0_17] : memref<16x128xbf16, #tpu.memory_space<vmem>>, vector<16x128xbf16>
    %21 = arith.truncf %18 : vector<128x128xf32> to vector<128x128xbf16>
    %cst_18 = arith.constant dense<0.000000e+00> : vector<16x128xf32>
    %22 = tpu.matmul %20, %21, %cst_18 {dimension_numbers = #tpu.dot_dimension_numbers<[1], [0], [0], [1], [0, 0, 1, 1], [], []>} : vector<16x128xbf16>, vector<128x128xbf16>, vector<16x128xf32> -> vector<16x128xf32>
    %23 = arith.addf %19, %22 : vector<16x128xf32>
    %c0_19 = arith.constant 0 : index
    %c0_20 = arith.constant 0 : index
    %24 = vector.load %arg21[%c0_19, %c0_20] : memref<16x128xf32, #tpu.memory_space<vmem>>, vector<16x128xf32>
    tpu.vector_store %arg21[%c0_19, %c0_20], %23 {strides = array<i32>} : memref<16x128xf32, #tpu.memory_space<vmem>>, vector<16x128xf32>,
    %c1_i32 = arith.constant 1 : i32
    %25 = arith.cmpi eq, %arg0, %c1_i32 : i32
    %26 = arith.extui %25 : i1 to i32
    %c0_i32_21 = arith.constant 0 : i32
    %27 = arith.cmpi ne, %26, %c0_i32_21 : i32
    scf.if %27 {
      %c0_22 = arith.constant 0 : index
      %c0_23 = arith.constant 0 : index
      %28 = vector.load %arg22[%c0_22, %c0_23] : memref<16x128xf32, #tpu.memory_space<vmem>>, vector<16x128xf32>
      %c0_24 = arith.constant 0 : index
      %c0_25 = arith.constant 0 : index
      %29 = vector.load %arg21[%c0_24, %c0_25] : memref<16x128xf32, #tpu.memory_space<vmem>>, vector<16x128xf32>
      %c0_26 = arith.constant 0 : index
      %c0_27 = arith.constant 0 : index
      %30 = vector.load %arg6[%c0_26, %c0_27] : memref<16x1xf32, #tpu.memory_space<vmem>>, vector<16x1xf32>
      %31 = vector.broadcast %30 : vector<16x1xf32> to vector<16x128xf32>
      %32 = arith.mulf %29, %31 : vector<16x128xf32>
      %33 = tpu.concatenate %32, %28 in 1 : vector<16x128xf32>, vector<16x128xf32> -> vector<16x256xf32>
      %34 = arith.truncf %33 : vector<16x256xf32> to vector<16x256xbf16>
      %c0_28 = arith.constant 0 : index
      %c0_29 = arith.constant 0 : index
      %35 = vector.load %arg9[%c0_28, %c0_29] : memref<256x128xbf16, #tpu.memory_space<vmem>>, vector<256x128xbf16>
      %cst_30 = arith.constant dense<0.000000e+00> : vector<16x128xf32>
      %36 = tpu.matmul %34, %35, %cst_30 {dimension_numbers = #tpu.dot_dimension_numbers<[1], [0], [0], [1], [0, 0, 1, 1], [], []>} : vector<16x256xbf16>, vector<256x128xbf16>, vector<16x128xf32> -> vector<16x128xf32>
      %c0_31 = arith.constant 0 : index
      %c0_32 = arith.constant 0 : index
      %37 = vector.load %arg10[%c0_31, %c0_32] : memref<1x128xf32, #tpu.memory_space<vmem>>, vector<1x128xf32>
      %38 = vector.broadcast %37 : vector<1x128xf32> to vector<16x128xf32>
      %39 = arith.addf %36, %38 : vector<16x128xf32>
      %cst_33 = arith.constant 0.000000e+00 : f32
      %40 = vector.broadcast %cst_33 : f32 to vector<16x128xf32>
      %41 = arith.maximumf %39, %40 : vector<16x128xf32>
      %42 = arith.mulf %41, %41 : vector<16x128xf32>
      %cst_34 = arith.constant dense<0.000000e+00> : vector<16xf32>
      %43 = vector.multi_reduction <add>, %42, %cst_34 [1] : vector<16x128xf32> to vector<16xf32>
      %44 = vector.shape_cast %43 : vector<16xf32> to vector<16x1xf32>
      %cst_35 = arith.constant 1.000000e-24 : f32
      %45 = vector.broadcast %cst_35 : f32 to vector<16x1xf32>
      %46 = arith.maximumf %44, %45 : vector<16x1xf32>
      %47 = math.rsqrt %46 : vector<16x1xf32>
      %48 = vector.broadcast %47 : vector<16x1xf32> to vector<16x128xf32>
      %49 = arith.mulf %41, %48 : vector<16x128xf32>
      %50 = arith.truncf %49 : vector<16x128xf32> to vector<16x128xbf16>
      %c0_36 = arith.constant 0 : index
      %c0_37 = arith.constant 0 : index
      %51 = vector.load %arg13[%c0_36, %c0_37] : memref<128x128xbf16, #tpu.memory_space<vmem>>, vector<128x128xbf16>
      %cst_38 = arith.constant dense<0.000000e+00> : vector<16x128xf32>
      %52 = tpu.matmul %50, %51, %cst_38 {dimension_numbers = #tpu.dot_dimension_numbers<[1], [0], [0], [1], [0, 0, 1, 1], [], []>} : vector<16x128xbf16>, vector<128x128xbf16>, vector<16x128xf32> -> vector<16x128xf32>
      %c0_39 = arith.constant 0 : index
      %c0_40 = arith.constant 0 : index
      %53 = vector.load %arg14[%c0_39, %c0_40] : memref<1x128xf32, #tpu.memory_space<vmem>>, vector<1x128xf32>
      %54 = vector.broadcast %53 : vector<1x128xf32> to vector<16x128xf32>
      %55 = arith.addf %52, %54 : vector<16x128xf32>
      %cst_41 = arith.constant 0.000000e+00 : f32
      %56 = vector.broadcast %cst_41 : f32 to vector<16x128xf32>
      %57 = arith.maximumf %55, %56 : vector<16x128xf32>
      %c0_42 = arith.constant 0 : index
      %c0_43 = arith.constant 0 : index
      %58 = vector.load %arg11[%c0_42, %c0_43] : memref<8x16xbf16, #tpu.memory_space<vmem>>, vector<8x16xbf16>
      %59 = arith.truncf %57 : vector<16x128xf32> to vector<16x128xbf16>
      %cst_44 = arith.constant dense<0.000000e+00> : vector<8x128xf32>
      %60 = tpu.matmul %58, %59, %cst_44 {dimension_numbers = #tpu.dot_dimension_numbers<[1], [0], [0], [1], [0, 0, 1, 1], [], []>} : vector<8x16xbf16>, vector<16x128xbf16>, vector<8x128xf32> -> vector<8x128xf32>
      %61 = vector.extract_strided_slice %49 {offsets = [0, 0], sizes = [8, 128], strides = [1, 1]} : vector<16x128xf32> to vector<8x128xf32>
      %c0_45 = arith.constant 0 : index
      %c0_46 = arith.constant 0 : index
      %62 = vector.load %arg12[%c0_45, %c0_46] : memref<8x1xf32, #tpu.memory_space<vmem>>, vector<8x1xf32>
      %63 = vector.broadcast %62 : vector<8x1xf32> to vector<8x128xf32>
      %64 = arith.mulf %60, %63 : vector<8x128xf32>
      %65 = tpu.concatenate %64, %61 in 1 : vector<8x128xf32>, vector<8x128xf32> -> vector<8x256xf32>
      %66 = arith.truncf %65 : vector<8x256xf32> to vector<8x256xbf16>
      %c0_47 = arith.constant 0 : index
      %c0_48 = arith.constant 0 : index
      %67 = vector.load %arg15[%c0_47, %c0_48] : memref<256x128xbf16, #tpu.memory_space<vmem>>, vector<256x128xbf16>
      %cst_49 = arith.constant dense<0.000000e+00> : vector<8x128xf32>
      %68 = tpu.matmul %66, %67, %cst_49 {dimension_numbers = #tpu.dot_dimension_numbers<[1], [0], [0], [1], [0, 0, 1, 1], [], []>} : vector<8x256xbf16>, vector<256x128xbf16>, vector<8x128xf32> -> vector<8x128xf32>
      %c0_50 = arith.constant 0 : index
      %c0_51 = arith.constant 0 : index
      %69 = vector.load %arg16[%c0_50, %c0_51] : memref<1x128xf32, #tpu.memory_space<vmem>>, vector<1x128xf32>
      %70 = vector.broadcast %69 : vector<1x128xf32> to vector<8x128xf32>
      %71 = arith.addf %68, %70 : vector<8x128xf32>
      %cst_52 = arith.constant 0.000000e+00 : f32
      %72 = vector.broadcast %cst_52 : f32 to vector<8x128xf32>
      %73 = arith.maximumf %71, %72 : vector<8x128xf32>
      %74 = arith.mulf %73, %73 : vector<8x128xf32>
      %cst_53 = arith.constant dense<0.000000e+00> : vector<8xf32>
      %75 = vector.multi_reduction <add>, %74, %cst_53 [1] : vector<8x128xf32> to vector<8xf32>
      %76 = vector.shape_cast %75 : vector<8xf32> to vector<8x1xf32>
      %cst_54 = arith.constant 1.000000e-24 : f32
      %77 = vector.broadcast %cst_54 : f32 to vector<8x1xf32>
      %78 = arith.maximumf %76, %77 : vector<8x1xf32>
      %79 = math.rsqrt %78 : vector<8x1xf32>
      %80 = vector.broadcast %79 : vector<8x1xf32> to vector<8x128xf32>
      %81 = arith.mulf %73, %80 : vector<8x128xf32>
      %82 = vector.extract_strided_slice %28 {offsets = [0, 0], sizes = [8, 128], strides = [1, 1]} : vector<16x128xf32> to vector<8x128xf32>
      %83 = arith.addf %81, %82 : vector<8x128xf32>
      %cst_55 = arith.constant 0.000000e+00 : f32
      %84 = vector.broadcast %cst_55 : f32 to vector<120x128xf32>
      %85 = tpu.concatenate %83, %84 in 0 : vector<8x128xf32>, vector<120x128xf32> -> vector<128x128xf32>
      %86 = tpu.transpose %85, [1, 0] : vector<128x128xf32> -> vector<128x128xf32>
      %87 = arith.truncf %86 : vector<128x128xf32> to vector<128x128xbf16>
      %c0_56 = arith.constant 0 : index
      %c0_57 = arith.constant 0 : index
      %88 = vector.load %arg17[%c0_56, %c0_57] : memref<128x512xbf16, #tpu.memory_space<vmem>>, vector<128x512xbf16>
      %cst_58 = arith.constant dense<0.000000e+00> : vector<128x512xf32>
      %89 = tpu.matmul %87, %88, %cst_58 {dimension_numbers = #tpu.dot_dimension_numbers<[1], [0], [0], [1], [0, 0, 1, 1], [], []>} : vector<128x128xbf16>, vector<128x512xbf16>, vector<128x512xf32> -> vector<128x512xf32>
      %90 = vector.extract_strided_slice %89 {offsets = [0, 0], sizes = [128, 128], strides = [1, 1]} : vector<128x512xf32> to vector<128x128xf32>
      %91 = vector.extract_strided_slice %89 {offsets = [0, 128], sizes = [128, 128], strides = [1, 1]} : vector<128x512xf32> to vector<128x128xf32>
      %92 = vector.extract_strided_slice %89 {offsets = [0, 256], sizes = [128, 128], strides = [1, 1]} : vector<128x512xf32> to vector<128x128xf32>
      %93 = vector.extract_strided_slice %89 {offsets = [0, 384], sizes = [128, 128], strides = [1, 1]} : vector<128x512xf32> to vector<128x128xf32>
      %94 = arith.mulf %90, %91 : vector<128x128xf32>
      %cst_59 = arith.constant dense<0.000000e+00> : vector<128xf32>
      %95 = vector.multi_reduction <add>, %94, %cst_59 [0] : vector<128x128xf32> to vector<128xf32>
      %96 = vector.shape_cast %95 : vector<128xf32> to vector<1x128xf32>
      %c0_60 = arith.constant 0 : index
      %c0_61 = arith.constant 0 : index
      %97 = vector.load %arg18[%c0_60, %c0_61] : memref<1x128xf32, #tpu.memory_space<vmem>>, vector<1x128xf32>
      %98 = arith.addf %96, %97 : vector<1x128xf32>
      %99 = arith.mulf %92, %93 : vector<128x128xf32>
      %cst_62 = arith.constant dense<0.000000e+00> : vector<128xf32>
      %100 = vector.multi_reduction <add>, %99, %cst_62 [0] : vector<128x128xf32> to vector<128xf32>
      %101 = vector.shape_cast %100 : vector<128xf32> to vector<1x128xf32>
      %c0_63 = arith.constant 0 : index
      %c0_64 = arith.constant 0 : index
      %102 = vector.load %arg19[%c0_63, %c0_64] : memref<1x128xf32, #tpu.memory_space<vmem>>, vector<1x128xf32>
      %103 = arith.addf %101, %102 : vector<1x128xf32>
      %104 = arith.subf %103, %98 : vector<1x128xf32>
      %cst_65 = arith.constant 1.000000e+00 : f32
      %105 = vector.broadcast %cst_65 : f32 to vector<1x128xf32>
      %106 = arith.addf %104, %105 : vector<1x128xf32>
      %cst_66 = arith.constant 0.000000e+00 : f32
      %107 = vector.broadcast %cst_66 : f32 to vector<1x128xf32>
      %108 = arith.maximumf %106, %107 : vector<1x128xf32>
      %c0_67 = arith.constant 0 : index
      %c0_68 = arith.constant 0 : index
      %109 = vector.load %arg20[%c0_67, %c0_68] : memref<1x128xf32, #tpu.memory_space<vmem>>, vector<1x128xf32>
      tpu.vector_store %arg20[%c0_67, %c0_68], %108 {strides = array<i32>} : memref<1x128xf32, #tpu.memory_space<vmem>>, vector<1x128xf32>,
    } else {
    }
    return
  }
  func.func @transform_0(%arg0: i32) -> (i32, i32) {
    %c0_i32 = arith.constant 0 : i32
    %c0_i32_0 = arith.constant 0 : i32
    return %arg0, %c0_i32 : i32, i32
  }
  func.func @transform_1(%arg0: i32) -> (i32, i32) {
    %c0_i32 = arith.constant 0 : i32
    %c0_i32_0 = arith.constant 0 : i32
    return %arg0, %c0_i32 : i32, i32
  }
  func.func @transform_2(%arg0: i32) -> (i32, i32) {
    %c0_i32 = arith.constant 0 : i32
    %c0_i32_0 = arith.constant 0 : i32
    %c0_i32_1 = arith.constant 0 : i32
    return %c0_i32, %c0_i32_0 : i32, i32
  }
  func.func @transform_3(%arg0: i32) -> (i32, i32) {
    %c0_i32 = arith.constant 0 : i32
    %c0_i32_0 = arith.constant 0 : i32
    %c0_i32_1 = arith.constant 0 : i32
    return %c0_i32, %c0_i32_0 : i32, i32
  }
  func.func @transform_4(%arg0: i32) -> (i32, i32) {
    %c0_i32 = arith.constant 0 : i32
    %c0_i32_0 = arith.constant 0 : i32
    return %c0_i32, %arg0 : i32, i32
  }
  func.func @transform_5(%arg0: i32) -> (i32, i32) {
    %c0_i32 = arith.constant 0 : i32
    %c0_i32_0 = arith.constant 0 : i32
    %c0_i32_1 = arith.constant 0 : i32
    return %c0_i32, %c0_i32_0 : i32, i32
  }
  func.func @transform_6(%arg0: i32) -> (i32, i32) {
    %c0_i32 = arith.constant 0 : i32
    %c0_i32_0 = arith.constant 0 : i32
    %c0_i32_1 = arith.constant 0 : i32
    return %c0_i32, %c0_i32_0 : i32, i32
  }
  func.func @transform_7(%arg0: i32) -> (i32, i32) {
    %c0_i32 = arith.constant 0 : i32
    %c0_i32_0 = arith.constant 0 : i32
    %c0_i32_1 = arith.constant 0 : i32
    return %c0_i32, %c0_i32_0 : i32, i32
  }
  func.func @transform_8(%arg0: i32) -> (i32, i32) {
    %c0_i32 = arith.constant 0 : i32
    %c0_i32_0 = arith.constant 0 : i32
    %c0_i32_1 = arith.constant 0 : i32
    return %c0_i32, %c0_i32_0 : i32, i32
  }
  func.func @transform_9(%arg0: i32) -> (i32, i32) {
    %c0_i32 = arith.constant 0 : i32
    %c0_i32_0 = arith.constant 0 : i32
    %c0_i32_1 = arith.constant 0 : i32
    return %c0_i32, %c0_i32_0 : i32, i32
  }
  func.func @transform_10(%arg0: i32) -> (i32, i32) {
    %c0_i32 = arith.constant 0 : i32
    %c0_i32_0 = arith.constant 0 : i32
    %c0_i32_1 = arith.constant 0 : i32
    return %c0_i32, %c0_i32_0 : i32, i32
  }
  func.func @transform_11(%arg0: i32) -> (i32, i32) {
    %c0_i32 = arith.constant 0 : i32
    %c0_i32_0 = arith.constant 0 : i32
    %c0_i32_1 = arith.constant 0 : i32
    return %c0_i32, %c0_i32_0 : i32, i32
  }
  func.func @transform_12(%arg0: i32) -> (i32, i32) {
    %c0_i32 = arith.constant 0 : i32
    %c0_i32_0 = arith.constant 0 : i32
    %c0_i32_1 = arith.constant 0 : i32
    return %c0_i32, %c0_i32_0 : i32, i32
  }
  func.func @transform_13(%arg0: i32) -> (i32, i32) {
    %c0_i32 = arith.constant 0 : i32
    %c0_i32_0 = arith.constant 0 : i32
    %c0_i32_1 = arith.constant 0 : i32
    return %c0_i32, %c0_i32_0 : i32, i32
  }
  func.func @transform_14(%arg0: i32) -> (i32, i32) {
    %c0_i32 = arith.constant 0 : i32
    %c0_i32_0 = arith.constant 0 : i32
    %c0_i32_1 = arith.constant 0 : i32
    return %c0_i32, %c0_i32_0 : i32, i32
  }
  func.func @transform_15(%arg0: i32) -> (i32, i32) {
    %c0_i32 = arith.constant 0 : i32
    %c0_i32_0 = arith.constant 0 : i32
    %c0_i32_1 = arith.constant 0 : i32
    return %c0_i32, %c0_i32_0 : i32, i32
  }
  func.func @transform_16(%arg0: i32) -> (i32, i32) {
    %c0_i32 = arith.constant 0 : i32
    %c0_i32_0 = arith.constant 0 : i32
    %c0_i32_1 = arith.constant 0 : i32
    return %c0_i32, %c0_i32_0 : i32, i32
  }
  func.func @transform_17(%arg0: i32) -> (i32, i32) {
    %c0_i32 = arith.constant 0 : i32
    %c0_i32_0 = arith.constant 0 : i32
    %c0_i32_1 = arith.constant 0 : i32
    return %c0_i32, %c0_i32_0 : i32, i32
  }
  func.func @transform_18(%arg0: i32) -> (i32, i32) {
    %c0_i32 = arith.constant 0 : i32
    %c0_i32_0 = arith.constant 0 : i32
    %c0_i32_1 = arith.constant 0 : i32
    return %c0_i32, %c0_i32_0 : i32, i32
  }
  func.func @transform_19(%arg0: i32) -> (i32, i32) {
    %c0_i32 = arith.constant 0 : i32
    %c0_i32_0 = arith.constant 0 : i32
    %c0_i32_1 = arith.constant 0 : i32
    return %c0_i32, %c0_i32_0 : i32, i32
  }
}

</mosaic_0001>

<bundles_post_ra>
// kernel: tpu_custom_call.1
= control target key start
LH: loop header
LB: loop body
LE: loop exit
PB: predicated region body
PF: predicated region fallthrough
CT: control target
= control target key end

     0   :  { %s4161_s0 = inlined_call_operand.hbm [shape: bf16[256,128], index: 0, kind: input, shape index: {}]   ;;  %s4162_s1 = inlined_call_operand.hbm [shape: f32[256,128], index: 1, kind: input, shape index: {}]   ;;  %s4163_s2 = inlined_call_operand.hbm [shape: bf16[128,128], index: 2, kind: input, shape index: {}]   ;;  %s4164_s3 = inlined_call_operand.vmem [shape: f32[1,128], index: 3, kind: input, shape index: {}]   ;;  %s4165_s4 = inlined_call_operand.hbm [shape: bf16[16,256], index: 4, kind: input, shape index: {}]   ;;  %s4166_s5 = inlined_call_operand.vmem [shape: f32[16,1], index: 5, kind: input, shape index: {}]   ;;  %s4167_s6 = inlined_call_operand.hbm [shape: bf16[128,128], index: 6, kind: input, shape index: {}]   ;;  %s4168_s7 = inlined_call_operand.vmem [shape: f32[1,128], index: 7, kind: input, shape index: {}]   ;;  %s4169_s8 = inlined_call_operand.hbm [shape: bf16[256,128], index: 8, kind: input, shape index: {}]   ;;  %s4170_s9 = inlined_call_operand.vmem [shape: f32[1,128], index: 9, kind: input, shape index: {}]   ;;  %s4171_s10 = inlined_call_operand.vmem [shape: bf16[8,16], index: 10, kind: input, shape index: {}]   ;;  %s4172_s11 = inlined_call_operand.vmem [shape: f32[8,1], index: 11, kind: input, shape index: {}]   ;;  %s4173_s12 = inlined_call_operand.vmem [shape: bf16[128,128], index: 12, kind: input, shape index: {}]   ;;  %s4174_s13 = inlined_call_operand.vmem [shape: f32[1,128], index: 13, kind: input, shape index: {}]   ;;  %s4175_s14 = inlined_call_operand.hbm [shape: bf16[256,128], index: 14, kind: input, shape index: {}]   ;;  %s4176_s15 = inlined_call_operand.vmem [shape: f32[1,128], index: 15, kind: input, shape index: {}]   ;;  %s4177_s16 = inlined_call_operand.hbm [shape: bf16[128,512], index: 16, kind: input, shape index: {}]   ;;  %s4178_s17 = inlined_call_operand.vmem [shape: f32[1,128], index: 17, kind: input, shape index: {}]   ;;  %s4179_s18 = inlined_call_operand.vmem [shape: f32[1,128], index: 18, kind: input, shape index: {}]   ;;  %s4180_s19 = inlined_call_operand.hbm [shape: f32[1,128], index: 19, kind: output, shape index: {}]  }
   0x1   :  { %4196 = sst [smem:[#allocation28_spill]] %s4161_s0 }
   0x2   :  { %4197 = sst [smem:[#allocation29_spill]] %s4162_s1 }
   0x3   :  { %4198 = sst [smem:[#allocation30_spill]] %s4163_s2 }
   0x4   :  { %4199 = sst [smem:[#allocation31_spill]] %s4164_s3 }
   0x5   :  { %4200 = sst [smem:[#allocation32_spill]] %s4167_s6 }
   0x6   :  { %4201 = sst [smem:[#allocation33_spill]] %s4169_s8 }
   0x7   :  { %4202 = sst [smem:[#allocation34_spill]] %s4170_s9 }
   0x8   :  { %4203 = sst [smem:[#allocation35_spill]] %s4171_s10 }
   0x9   :  { %4204 = sst [smem:[#allocation36_spill]] %s4173_s12 }
   0xa   :  { %4205 = sst [smem:[#allocation37_spill]] %s4174_s13 }
   0xb   :  { %4206 = sst [smem:[#allocation38_spill]] %s4175_s14 }
   0xc   :  { %4207 = sst [smem:[#allocation39_spill]] %s4176_s15 }
   0xd   :  { %4208 = sst [smem:[#allocation40_spill]] %s4177_s16 }
   0xe   :  { %4209 = sst [smem:[#allocation41_spill]] %s4178_s17 }
   0xf   :  { %4210 = sst [smem:[#allocation42_spill]] %s4179_s18 }
  0x10   :  { %4211 = sst [smem:[#allocation43_spill]] %s4180_s19 }
  0x11   :  { %24 = vsyncpa [#allocation5], 0 }
  0x12   :  { %26 = vsyncpa [#allocation5 + $0x1], 0 }
  0x13   :  { %27 = vsyncpa [#allocation8], 0 }
  0x14   :  { %29 = vsyncpa [#allocation8 + $0x1], 0 }
  0x15   :  { %30 = vsyncpa [#allocation11], 0 }
  0x16   :  { %32 = vsyncpa [#allocation11 + $0x1], 0 }
  0x17   :  { %33 = vsyncpa [#allocation14], 0 }
  0x18   :  { %34 = vsyncpa [#allocation17], 0 }
  0x19   :  { %35 = vsyncpa [#allocation6], 0  ;;  %s3585_s0 = smov 0   ;;  %s3587_s30 = smov 0  }
  0x1a   :  { %s3589_s20 = smov 0   ;;  %s3591_s21 = smov 0  }
  0x1b LB: > { %s3604_s1 = sadd.s32 4294967295, %s3462_s21   ;;  %p61_p0 = scmp.ne.s32.totalorder %s3454_s30, %s3450_s0  ;;  %s3462_s21 = sphi %s3591_s21, %s4254_s21   ;;  %s3458_s20 = sphi %s3589_s20, %s4253_s20   ;;  %s3454_s30 = sphi %s3587_s30, %s4252_s30   ;;  %s3450_s0 = sphi %s3585_s0, %s4251_s0  }
  0x1c   : > { %p4185_p1 = scmp.eq.s32.totalorder %s3604_s1, 0  ;;  %p2548_p2 = scmp.ge.s32.totalorder %s3462_s21, 1 }
  0x1d   : > { %p481_p3 = scmp.lt.s32.totalorder %s3462_s21, 3  ;;  %s3464_s23 = smov [#allocation9]  }
  0x1e   : > { %p3613_p5 = por %p4185_p1, %p61_p0  ;;  %s493_s24 = sshll.u32 %s3464_s23, 4  ;;  %s3621_s24 = int_to_ptr.vmem [resolvable:$true] %s493_s24 }
  0x1f   : > { %p3617_p6 = pnand %p2548_p2, %p481_p3  ;;  %s3465_s3 = smov [#allocation12]  }
  0x20   : > { %s4212_s22 = scalar_select %p3613_p5, 1, 0 }
  0x21   : > { %s4213_s2 = scalar_select %p3617_p6, 1, 0 }
  0x22   : > { %p2935_p7 = pneg %p3617_p6  ;;  %s512_s26 = sshll.u32 %s3465_s3, 4  ;;  %s3631_s26 = int_to_ptr.vmem [resolvable:$true] %s512_s26 }
  0x23   : > { %s3466_s27 = smov [#allocation13]   ;;  %s4215_s23 = sld [smem:[#allocation30_spill]] }
  0x24   : > { %p3627_p8 = pnand %p2935_p7, %p4185_p1  ;;  %s3633_s28 = sshll.u32 %s3466_s27, 4  ;;  %s529_s28 = int_to_ptr.vmem [resolvable:$true] %s3633_s28 }
  0x26   : > { %p3643_p10 = pneg %p3627_p8 }
  0x29   : > { %s3144_s19 = scalar_lea.hbm %s4215_s23, 1024 }
  0x2a   : > { %p3145_p9 = scmp.ne.s32.totalorder %s4215_s23, %s3144_s19  ;;  %p3151_p13 = scmp.lt.u32.totalorder %s3144_s19, %s4215_s23 }
  0x2c   : > { %p3147_p11 = pnand %p3643_p10, %p3145_p9 }
  0x2e   : > { %p3148_p12 = pneg %p3147_p11 }
  0x30   : > { %p3153_p0 = pnand %p3151_p13, %p3148_p12 }
  0x32   : > { %3156 = shalt.err (!%p3153_p0)
}
  0x33   : > { %s3157_s17 = scalar_lea.vmem %s3621_s24, 1024  ;;  %p3165_p4 = scmp.lt.s32.totalorder %s3621_s24, %s3621_s24 }
  0x34   : > { %p3158_p2 = scmp.ne.s32.totalorder %s3621_s24, %s3157_s17  ;;  %p3166_p1 = scmp.lt.s32.totalorder %s3157_s17, %s3157_s17 }
  0x36   : > { %p3160_p3 = pnand %p3158_p2, %p3643_p10  ;;  %p3167_p9 = por %p3166_p1, %p3165_p4 }
  0x38   : > { %p3161_p7 = pneg %p3160_p3 }
  0x3a   : > { %p3168_p11 = pnand %p3167_p9, %p3161_p7 }
  0x3c   : > { %3171 = shalt.err (!%p3168_p11)
}
  0x3d   : > { %s4189_s18 = smov 64   ;;  %s4191_s19 = smov 4  }
  0x3e   : > { %2938 = dma.hbm_to_vmem [thread:$0]  (!%p3627_p8), %s4215_s23, 1024, %s3621_s24, [#allocation8], %s4189_s18, %s4189_s18, %s4191_s19  }
  0x3f   : > { %s4217_s6 = sld [smem:[#allocation32_spill]] }
  0x45   : > { %s3172_s17 = scalar_lea.hbm %s4217_s6, 1024 }
  0x46   : > { %p3173_p1 = scmp.ne.s32.totalorder %s4217_s6, %s3172_s17  ;;  %p3179_p13 = scmp.lt.u32.totalorder %s3172_s17, %s4217_s6 }
  0x48   : > { %p3175_p4 = pnand %p3173_p1, %p3643_p10 }
  0x4a   : > { %p3176_p12 = pneg %p3175_p4 }
  0x4c   : > { %p3181_p0 = pnand %p3179_p13, %p3176_p12 }
  0x4e   : > { %3184 = shalt.err (!%p3181_p0)
}
  0x4f   : > { %s3185_s24 = scalar_lea.vmem %s3631_s26, 1024  ;;  %p3193_p9 = scmp.lt.s32.totalorder %s3631_s26, %s3631_s26 }
  0x50   : > { %p3186_p2 = scmp.ne.s32.totalorder %s3631_s26, %s3185_s24  ;;  %p3194_p11 = scmp.lt.s32.totalorder %s3185_s24, %s3185_s24 }
  0x52   : > { %p3188_p3 = pnand %p3186_p2, %p3643_p10  ;;  %p3195_p1 = por %p3194_p11, %p3193_p9 }
  0x54   : > { %p3189_p7 = pneg %p3188_p3 }
  0x56   : > { %p3196_p4 = pnand %p3195_p1, %p3189_p7 }
  0x58   : > { %3199 = shalt.err (!%p3196_p4)
}
  0x59   : > { %2941 = dma.hbm_to_vmem [thread:$0]  (!%p3627_p8), %s4217_s6, 1024, %s3631_s26, [#allocation11], %s4189_s18, %s4189_s18, %s4191_s19  }
  0x5a   : > { %s4218_s8 = sld [smem:[#allocation33_spill]] }
  0x60   : > { %s3200_s29 = scalar_lea.hbm %s4218_s8, 2048 }
  0x61   : > { %p3201_p12 = scmp.ne.s32.totalorder %s4218_s8, %s3200_s29  ;;  %p3207_p2 = scmp.lt.u32.totalorder %s3200_s29, %s4218_s8 }
  0x63   : > { %p3203_p13 = pnand %p3201_p12, %p3643_p10 }
  0x65   : > { %p3204_p0 = pneg %p3203_p13 }
  0x67   : > { %p3209_p3 = pnand %p3207_p2, %p3204_p0 }
  0x69   : > { %3212 = shalt.err (!%p3209_p3)
}
  0x6a   : > { %s3213_s24 = scalar_lea.vmem %s529_s28, 2048  ;;  %p3221_p1 = scmp.lt.s32.totalorder %s529_s28, %s529_s28 }
  0x6b   : > { %p3214_p7 = scmp.ne.s32.totalorder %s529_s28, %s3213_s24  ;;  %p3222_p4 = scmp.lt.s32.totalorder %s3213_s24, %s3213_s24 }
  0x6d   : > { %p3216_p9 = pnand %p3214_p7, %p3643_p10  ;;  %p3223_p5 = por %p3222_p4, %p3221_p1 }
  0x6f   : > { %p3217_p11 = pneg %p3216_p9 }
  0x71   : > { %p3224_p6 = pnand %p3223_p5, %p3217_p11 }
  0x73   : > { %3227 = shalt.err (!%p3224_p6)
}
  0x74   : > { %2944 = dma.hbm_to_vmem [thread:$0]  (!%p3627_p8), %s4218_s8, 2048, %s529_s28, [#allocation14], %s4189_s18, %s4189_s18, %s4191_s19  }
  0x75   : > { %s3469_s10 = smov [#allocation15]   ;;  %s3470_s13 = smov [#allocation16]  }
  0x76   : > { %s556_s12 = sshll.u32 %s3469_s10, 4  ;;  %s572_s29 = sshll.u32 %s3470_s13, 4  ;;  %s557_s12 = int_to_ptr.vmem [resolvable:$true] %s556_s12  ;;  %s573_s29 = int_to_ptr.vmem [resolvable:$true] %s572_s29 }
  0x77   : > { %s4219_s14 = sld [smem:[#allocation38_spill]] }
  0x7d   : > { %s3228_s27 = scalar_lea.hbm %s4219_s14, 2048 }
  0x7e   : > { %p3229_p5 = scmp.ne.s32.totalorder %s4219_s14, %s3228_s27  ;;  %p3235_p13 = scmp.lt.u32.totalorder %s3228_s27, %s4219_s14 }
  0x80   : > { %p3231_p6 = pnand %p3229_p5, %p3643_p10 }
  0x82   : > { %p3232_p12 = pneg %p3231_p6 }
  0x84   : > { %p3237_p0 = pnand %p3235_p13, %p3232_p12 }
  0x86   : > { %3240 = shalt.err (!%p3237_p0)
}
  0x87   : > { %s3241_s28 = scalar_lea.vmem %s557_s12, 2048  ;;  %p3249_p9 = scmp.lt.s32.totalorder %s557_s12, %s557_s12 }
  0x88   : > { %p3242_p2 = scmp.ne.s32.totalorder %s557_s12, %s3241_s28  ;;  %p3250_p11 = scmp.lt.s32.totalorder %s3241_s28, %s3241_s28 }
  0x8a   : > { %p3244_p3 = pnand %p3242_p2, %p3643_p10  ;;  %p3251_p1 = por %p3250_p11, %p3249_p9 }
  0x8c   : > { %p3245_p7 = pneg %p3244_p3 }
  0x8e   : > { %p3252_p4 = pnand %p3251_p1, %p3245_p7 }
  0x90   : > { %3255 = shalt.err (!%p3252_p4)
}
  0x91   : > { %2947 = dma.hbm_to_vmem [thread:$0]  (!%p3627_p8), %s4219_s14, 2048, %s557_s12, [#allocation14], %s4189_s18, %s4189_s18, %s4191_s19  }
  0x92   : > { %s4220_s16 = sld [smem:[#allocation40_spill]] }
  0x98   : > { %s3256_s0 = scalar_lea.hbm %s4220_s16, 4096 }
  0x99   : > { %p3257_p5 = scmp.ne.s32.totalorder %s4220_s16, %s3256_s0  ;;  %p3263_p13 = scmp.lt.u32.totalorder %s3256_s0, %s4220_s16 }
  0x9b   : > { %p3259_p6 = pnand %p3257_p5, %p3643_p10 }
  0x9d   : > { %p3260_p12 = pneg %p3259_p6 }
  0x9f   : > { %p3265_p0 = pnand %p3263_p13, %p3260_p12 }
  0xa1   : > { %3268 = shalt.err (!%p3265_p0)
}
  0xa2   : > { %s3269_s26 = scalar_lea.vmem %s573_s29, 4096  ;;  %p3277_p9 = scmp.lt.s32.totalorder %s573_s29, %s573_s29 }
  0xa3   : > { %p3270_p2 = scmp.ne.s32.totalorder %s573_s29, %s3269_s26  ;;  %p3278_p11 = scmp.lt.s32.totalorder %s3269_s26, %s3269_s26 }
  0xa5   : > { %p3272_p3 = pnand %p3270_p2, %p3643_p10  ;;  %p3279_p1 = por %p3278_p11, %p3277_p9 }
  0xa7   : > { %p3273_p7 = pneg %p3272_p3 }
  0xa9   : > { %p3280_p4 = pnand %p3279_p1, %p3273_p7 }
  0xab   : > { %3283 = shalt.err (!%p3280_p4)
}
  0xac   : > { %s3471_s12 = smov 256   ;;  %s3472_s15 = smov 16  }
  0xad   : > { %2950 = dma.hbm_to_vmem [thread:$0]  (!%p3627_p8), %s4220_s16, 4096, %s573_s29, [#allocation17], %s3471_s12, %s3471_s12, %s3472_s15  }
  0xae   : > { %s3755_s9 = sadd.s32 1, %s3462_s21   ;;  %s48_s13 = sadd.s32 1, %s3458_s20 }
  0xaf   : > { %s45_s10 = ssub.s32 %s3462_s21, %s3755_s9  ;;  %p55_p5 = scmp.ne.s32.totalorder %s3458_s20, %s3454_s30 }
  0xb0   : > { %p46_p10 = scmp.eq.s32.totalorder %s45_s10, 0  ;;  %p56_p6 = scmp.eq.s32.totalorder %s3462_s21, 0 }
  0xb1   : > { %p2966_p12 = scmp.lt.s32.totalorder %s3462_s21, 2  ;;  %s3768_s3 = sand.u32 1, %s3458_s20  }
  0xb2   : > { %s3765_s0 = scalar_select %p46_p10, %s3458_s20, %s48_s13  }
  0xb3   : > { %p57_p13 = por %p56_p6, %p55_p5  ;;  %s2555_s25 = sshll.u32 %s3768_s3, 6 }
  0xb4   : > { %4221 = sst [smem:[#allocation27_spill]] %s3765_s0  ;;  %s2681_s29 = sshll.u32 %s3462_s21, 10 }
  0xb5   : > { %s4222_s24 = sld [smem:[#allocation28_spill]]  ;;  %s596_s12 = scalar_lea.vmem [#allocation4], %s2555_s25 }
  0xb6   : > { %s603_s15 = sshll.u32 %s596_s12, 4  ;;  %p3779_p8 = pnand %p2966_p12, %p57_p13  ;;  %s3777_s15 = int_to_ptr.vmem [resolvable:$true] %s603_s15 }
  0xb7   : > { %s2558_s10 = sshll.u32 %s3768_s3, 7  ;;  %s593_s13 = scalar_lea.sflag [#allocation5], %s3768_s3 }
  0xb8   : > { %p3790_p2 = pneg %p3779_p8 }
  0xbb   : > { %s3775_s26 = scalar_lea.hbm %s4222_s24, %s2681_s29  ;;  %s3289_s17 = scalar_lea.hbm %s4222_s24, 2048 }
  0xbc   : > { %s3284_s18 = scalar_lea.hbm %s3775_s26, 1024  ;;  %p3290_p9 = scmp.lt.u32.totalorder %s3775_s26, %s4222_s24 }
  0xbd   : > { %p3285_p0 = scmp.ne.s32.totalorder %s3775_s26, %s3284_s18  ;;  %p3291_p11 = scmp.lt.u32.totalorder %s3289_s17, %s3284_s18 }
  0xbe   : > { %p3293_p4 = scmp.lt.u32.totalorder %s3284_s18, %s3775_s26 }
  0xbf   : > { %p3287_p3 = pnand %p3790_p2, %p3285_p0  ;;  %p3292_p1 = por %p3291_p11, %p3290_p9 }
  0xc1   : > { %p3288_p7 = pneg %p3287_p3  ;;  %p3294_p10 = por %p3293_p4, %p3292_p1 }
  0xc3   : > { %p3295_p5 = pnand %p3294_p10, %p3288_p7 }
  0xc5   : > { %3298 = shalt.err (!%p3295_p5)
}
  0xc6   : > { %s3299_s6 = scalar_lea.vmem %s3777_s15, 1024  ;;  %s3473_s25 = smov [#allocation4]  }
  0xc7   : > { %p3300_p6 = scmp.ne.s32.totalorder %s3777_s15, %s3299_s6  ;;  %s3304_s27 = sshll.u32 %s3473_s25, 4  ;;  %s3305_s27 = int_to_ptr.vmem [resolvable:$false] %s3304_s27 }
  0xc8   : > { %s3306_s19 = scalar_lea.vmem %s3305_s27, 2048  ;;  %p3307_p0 = scmp.lt.s32.totalorder %s3777_s15, %s3305_s27 }
  0xc9   : > { %p3302_p12 = pnand %p3300_p6, %p3790_p2  ;;  %p3308_p3 = scmp.lt.s32.totalorder %s3306_s19, %s3299_s6 }
  0xcb   : > { %p3303_p13 = pneg %p3302_p12  ;;  %p3309_p9 = por %p3308_p3, %p3307_p0 }
  0xcd   : > { %p3310_p11 = pnand %p3309_p9, %p3303_p13 }
  0xcf   : > { %3313 = shalt.err (!%p3310_p11)
}
  0xd0   : > { %s4225_s18 = smov 4   ;;  %s4226_s17 = smov 64  }
  0xd1   : > { %2954 = dma.hbm_to_vmem [thread:$0]  (!%p3779_p8), %s3775_s26, 1024, %s3777_s15, %s593_s13, %s4226_s17, %s4226_s17, %s4225_s18  }
  0xd2   : > { %s2682_s12 = sshll.u32 %s3462_s21, 11  ;;  %s4227_s27 = sld [smem:[#allocation29_spill]] }
  0xd3   : > { %s617_s8 = scalar_lea.vmem [#allocation7], %s2558_s10  ;;  %s4228_s16 = sand.u32 1, %s3462_s21  }
  0xd4   : > { %s624_s14 = sshll.u32 %s617_s8, 4  ;;  %s3830_s23 = scalar_lea.sflag [#allocation8], %s4228_s16  ;;  %s3826_s14 = int_to_ptr.vmem [resolvable:$true] %s624_s14 }
  0xd8   : > { %s3822_s19 = scalar_lea.hbm %s4227_s27, %s2682_s12  ;;  %s3319_s13 = scalar_lea.hbm %s4227_s27, 4096 }
  0xd9   : > { %s3314_s24 = scalar_lea.hbm %s3822_s19, 2048  ;;  %p3320_p10 = scmp.lt.u32.totalorder %s3822_s19, %s4227_s27 }
  0xda   : > { %p3315_p7 = scmp.ne.s32.totalorder %s3822_s19, %s3314_s24  ;;  %p3321_p5 = scmp.lt.u32.totalorder %s3319_s13, %s3314_s24 }
  0xdb   : > { %p3323_p12 = scmp.lt.u32.totalorder %s3314_s24, %s3822_s19 }
  0xdc   : > { %p3317_p1 = pnand %p3315_p7, %p3790_p2  ;;  %p3322_p6 = por %p3321_p5, %p3320_p10 }
  0xde   : > { %p3318_p4 = pneg %p3317_p1  ;;  %p3324_p13 = por %p3323_p12, %p3322_p6 }
  0xe0   : > { %p3325_p0 = pnand %p3324_p13, %p3318_p4 }
  0xe2   : > { %3328 = shalt.err (!%p3325_p0)
}
  0xe3   : > { %s3329_s8 = scalar_lea.vmem %s3826_s14, 2048  ;;  %s3474_s16 = smov [#allocation7]  }
  0xe4   : > { %p3330_p3 = scmp.ne.s32.totalorder %s3826_s14, %s3329_s8  ;;  %s3334_s10 = sshll.u32 %s3474_s16, 4  ;;  %s3335_s10 = int_to_ptr.vmem [resolvable:$false] %s3334_s10 }
  0xe5   : > { %s3336_s6 = scalar_lea.vmem %s3335_s10, 4096  ;;  %p3337_p7 = scmp.lt.s32.totalorder %s3826_s14, %s3335_s10 }
  0xe6   : > { %p3332_p9 = pnand %p3330_p3, %p3790_p2  ;;  %p3338_p1 = scmp.lt.s32.totalorder %s3336_s6, %s3329_s8 }
  0xe8   : > { %p3333_p11 = pneg %p3332_p9  ;;  %p3339_p10 = por %p3338_p1, %p3337_p7 }
  0xea   : > { %p3340_p5 = pnand %p3339_p10, %p3333_p11 }
  0xec   : > { %3343 = shalt.err (!%p3340_p5)
}
  0xed   : > { %s3475_s24 = smov 128   ;;  %s3476_s26 = smov 8  }
  0xee   : > { %2957 = dma.hbm_to_vmem [thread:$0]  (!%p3779_p8), %s3822_s19, 2048, %s3826_s14, %s3830_s23, %s3475_s24, %s3475_s24, %s3476_s26  }
  0xef   : > { %s2561_s15 = sshll.u32 %s3768_s3, 3  ;;  %s2562_s13 = sshll.u32 %s3462_s21, 6 }
  0xf0   : > { %s3861_s8 = scalar_lea.hbm %s4165_s4, %s2562_s13  ;;  %s638_s16 = scalar_lea.vmem [#allocation10], %s2561_s15 }
  0xf1   : > { %s644_s10 = sshll.u32 %s638_s16, 4  ;;  %s4229_s6 = sand.u32 1, %s3462_s21   ;;  %s3863_s10 = int_to_ptr.vmem [resolvable:$true] %s644_s10 }
  0xf2   : > { %s3867_s27 = scalar_lea.sflag [#allocation11], %s4229_s6  ;;  %s3344_s0 = scalar_lea.hbm %s3861_s8, 128 }
  0xf3   : > { %p3345_p4 = scmp.ne.s32.totalorder %s3861_s8, %s3344_s0  ;;  %s3349_s3 = scalar_lea.hbm %s4165_s4, 256 }
  0xf4   : > { %p3350_p13 = scmp.lt.u32.totalorder %s3861_s8, %s4165_s4  ;;  %p3351_p0 = scmp.lt.u32.totalorder %s3349_s3, %s3344_s0 }
  0xf5   : > { %p3347_p6 = pnand %p3345_p4, %p3790_p2  ;;  %p3353_p9 = scmp.lt.u32.totalorder %s3344_s0, %s3861_s8 }
  0xf6   : > { %p3352_p3 = por %p3351_p0, %p3350_p13 }
  0xf7   : > { %p3348_p12 = pneg %p3347_p6 }
  0xf8   : > { %p3354_p11 = por %p3353_p9, %p3352_p3 }
  0xfa   : > { %p3355_p7 = pnand %p3354_p11, %p3348_p12 }
  0xfc   : > { %3358 = shalt.err (!%p3355_p7)
}
  0xfd   : > { %s3359_s21 = scalar_lea.vmem %s3863_s10, 128  ;;  %s3477_s15 = smov [#allocation10]  }
  0xfe   : > { %p3360_p1 = scmp.ne.s32.totalorder %s3863_s10, %s3359_s21  ;;  %s3364_s13 = sshll.u32 %s3477_s15, 4  ;;  %s3365_s13 = int_to_ptr.vmem [resolvable:$false] %s3364_s13 }
  0xff   : > { %s3366_s12 = scalar_lea.vmem %s3365_s13, 256  ;;  %p3367_p4 = scmp.lt.s32.totalorder %s3863_s10, %s3365_s13 }
 0x100   : > { %p3362_p10 = pnand %p3360_p1, %p3790_p2  ;;  %p3368_p6 = scmp.lt.s32.totalorder %s3366_s12, %s3359_s21 }
 0x102   : > { %p3363_p5 = pneg %p3362_p10  ;;  %p3369_p13 = por %p3368_p6, %p3367_p4 }
 0x104   : > { %p3370_p0 = pnand %p3369_p13, %p3363_p5 }
 0x106   : > { %3373 = shalt.err (!%p3370_p0)
}
 0x107   : > { %2960 = dma.hbm_to_vmem [thread:$0]  (!%p3779_p8), %s3861_s8, 128, %s3863_s10, %s3867_s27, %s3475_s24, %s4226_s17, %s4225_s18  }
 0x108   : > { %p4230_p2 = scmp.ne.s32.totalorder %s4213_s2, 0 }
 0x109   : > { %s658_s0 = sand.u32 (!%p4230_p2), 1, %s3454_s30   ;;  %p4231_p12 = scmp.ne.s32.totalorder (!%p4230_p2), %s4212_s22, 0 }
 0x10a   : > { %656 = sbr.rel (%p4230_p2) target bundleno = 2781 (0xadd), region = 96  ;;  %s2564_s29 = sshll.u32 (!%p4230_p2), %s658_s0, 6 }
 0x10b   : > { %s659_s25 = scalar_lea.sflag (!%p4230_p2), [#allocation5], %s658_s0  ;;  %s3897_s16 = scalar_lea.vmem (!%p4230_p2), [#allocation4], %s2564_s29 }
 0x111   : > { %3417 = dma.done.wait (%p4231_p12), %s659_s25, 1024  }
 0x112   : > { %3419 = vsyncadd (%p4231_p12), %s659_s25, 4294966272  ;;  %s667_s28 = sand.u32 1, %s3604_s1   ;;  %s2565_s6 = sshll.u32 %s658_s0, 7 }
 0x113   : > { %s668_s18 = scalar_lea.sflag [#allocation8], %s667_s28  ;;  %s3904_s17 = scalar_lea.vmem [#allocation7], %s2565_s6 }
 0x114   : > { %3421 = dma.done.wait (%p4231_p12), %s668_s18, 2048  }
 0x115   : > { %3423 = vsyncadd (%p4231_p12), %s668_s18, 4294965248  ;;  %p4232_p8 = scmp.eq.s32.totalorder %s3604_s1, 0 }
 0x117   : > { %3425 = dma.done.wait (%p4232_p8), [#allocation8], 1024   ;;  %p4233_p3 = pmov %p4232_p8 }
 0x118   : > { %s2567_s2 = sshll.u32 %s658_s0, 3  ;;  %s681_s27 = scalar_lea.sflag [#allocation11], %s667_s28 }
 0x119   : > { %3427 = vsyncadd (%p4233_p3), [#allocation8], 4294966272  ;;  %s3914_s24 = scalar_lea.vmem [#allocation10], %s2567_s2 }
 0x11a   : > { %3429 = dma.done.wait (%p4231_p12), %s681_s27, 128  }
 0x11b   : > { %3431 = vsyncadd (%p4231_p12), %s681_s27, 4294967168  ;;  %p4234_p9 = pmov %p4233_p3 }
 0x11c   : > { %p4235_p11 = pmov %p4233_p3 }
 0x11d   : > { %3433 = dma.done.wait (%p4234_p9), [#allocation11], 1024  }
 0x11e   : > { %3435 = vsyncadd (%p4235_p11), [#allocation11], 4294966272  ;;  %p4236_p7 = pmov %p4233_p3 }
 0x11f   : > { %p4237_p1 = pmov %p4233_p3 }
 0x120   : > { %3437 = dma.done.wait (%p4236_p7), [#allocation14], 4096  }
 0x121   : > { %3439 = vsyncadd (%p4237_p1), [#allocation14], 4294963200  ;;  %p4238_p10 = pmov %p4237_p1 }
 0x122   : > { %p4239_p5 = pmov %p4237_p1 }
 0x123   : > { %3441 = dma.done.wait (%p4238_p10), [#allocation17], 4096  }
 0x124   : > { %3443 = vsyncadd (%p4239_p5), [#allocation17], 4294963200  ;;  %v3024_v0 = vld [vmem:[#allocation9] sm:$0xff]   ;;  %v3025_v1 = vld [vmem:[#allocation9 + $0x8] sm:$0xff]   ;;  %s4240_s10 = sld [smem:[#allocation31_spill]]  ;;  %p4241_p4 = scmp.ne.s32.totalorder %s3604_s1, 0 }
 0x125   : > { %2779 = vmatprep.subr.bf16.mxu0 %v3024_v0  ;;  %v3026_v2 = vld [vmem:[#allocation9 + $0x10] sm:$0xff]   ;;  %v3027_v3 = vld [vmem:[#allocation9 + $0x18] sm:$0xff]   ;;  %v3032_v4 = vld [vmem:[%s3897_s16] sm:$0xff]  }
 0x126   : > { %2780 = vmatpush3.bf16.msra.mxu0 %v3024_v0  ;;  %2795 = vmatprep.mubr.bf16.mxu0 %v3032_v4  ;;  %v3028_v5 = vld [vmem:[#allocation9 + $0x20] sm:$0xff]   ;;  %v3029_v6 = vld [vmem:[#allocation9 + $0x28] sm:$0xff]   ;;  %v3030_v7 = vld [vmem:[#allocation9 + $0x30] sm:$0xff]  }
 0x127   : > { %2781 = vmatprep.subr.bf16.mxu0 %v3025_v1  ;;  %v3031_v8 = vld [vmem:[#allocation9 + $0x38] sm:$0xff]   ;;  %v3033_v9 = vld [vmem:[%s3897_s16 + $0x8] sm:$0xff]   ;;  %v3034_v10 = vld [vmem:[%s3897_s16 + $0x10] sm:$0xff]  }
 0x128   : > { %v3035_v11 = vld [vmem:[%s3897_s16 + $0x18] sm:$0xff]   ;;  %v3036_v12 = vld [vmem:[%s3897_s16 + $0x20] sm:$0xff]   ;;  %v3037_v13 = vld [vmem:[%s3897_s16 + $0x28] sm:$0xff]  }
 0x129   : > { %v3038_v14 = vld [vmem:[%s3897_s16 + $0x30] sm:$0xff]   ;;  %v3039_v15 = vld [vmem:[%s3897_s16 + $0x38] sm:$0xff]   ;;  %v995_v21 = vld [vmem:[%s3904_s17] sm:$0xff] }
 0x12a   : > { %2782 = vmatpush3.bf16.msra.mxu0 %v3025_v1  ;;  %v2572_v16 = vld [vmem:[%s4240_s10] ss:$0 sm:$0xff]  ;;  %v997_v18 = vld [vmem:[%s3904_s17 + $0x10] sm:$0xff]  ;;  %v998_v24 = vld [vmem:[%s3904_s17 + $0x18] sm:$0xff] }
 0x12b   : > { %2783 = vmatprep.subr.bf16.mxu0 %v3026_v2  ;;  %v996_v28 = vld [vmem:[%s3904_s17 + $0x8] sm:$0xff]  ;;  %v1001_v34 = vld [vmem:[%s3904_s17 + $0x30] sm:$0xff]  ;;  %v999_v37 = vld [vmem:[%s3904_s17 + $0x20] sm:$0xff] }
 0x12c   : > { %v1002_v40 = vld [vmem:[%s3904_s17 + $0x38] sm:$0xff]  ;;  %v1000_v44 = vld [vmem:[%s3904_s17 + $0x28] sm:$0xff]  ;;  %v1005_v50 = vld [vmem:[%s3904_s17 + $0x50] sm:$0xff] }
 0x12d   : > { %v1003_v53 = vld [vmem:[%s3904_s17 + $0x40] sm:$0xff]  ;;  %v1006_v56 = vld [vmem:[%s3904_s17 + $0x58] sm:$0xff]  ;;  %v1004_v60 = vld [vmem:[%s3904_s17 + $0x48] sm:$0xff] }
 0x12e   : > { %2784 = vmatpush3.bf16.msra.mxu0 %v3026_v2  ;;  %v1009_v2 = vld [vmem:[%s3904_s17 + $0x70] sm:$0xff] }
 0x12f   : > { %2785 = vmatprep.subr.bf16.mxu0 %v3027_v3 }
 0x132   : > { %2786 = vmatpush3.bf16.msra.mxu0 %v3027_v3 }
 0x133   : > { %2787 = vmatprep.subr.bf16.mxu0 %v3028_v5 }
 0x136   : > { %2788 = vmatpush3.bf16.msra.mxu0 %v3028_v5  ;;  %v1007_v5 = vld [vmem:[%s3904_s17 + $0x60] sm:$0xff] }
 0x137   : > { %2789 = vmatprep.subr.bf16.mxu0 %v3029_v6 }
 0x13a   : > { %2790 = vmatpush3.bf16.msra.mxu0 %v3029_v6 }
 0x13b   : > { %2791 = vmatprep.subr.bf16.mxu0 %v3030_v7 }
 0x13e   : > { %2792 = vmatpush3.bf16.msra.mxu0 %v3030_v7 }
 0x13f   : > { %2793 = vmatprep.subr.bf16.mxu0 %v3031_v8 }
 0x142   : > { %2794 = vmatpush3.bf16.msra.mxu0 %v3031_v8  ;;  %v1010_v8 = vld [vmem:[%s3904_s17 + $0x78] sm:$0xff] }
 0x145   : > { %2796 = vmatmul.mubr.bf16.vlgmr.msra.gmra.mrb[0].mxu0 %v3033_v9 }
 0x146   : > { %2799 = vmatprep.mubr.bf16.mxu0 %v3034_v10 }
 0x14d   : > { %2800 = vmatmul.mubr.bf16.gmra.mrb[4].mxu0 %v3035_v11 }
 0x14e   : > { %2803 = vmatprep.mubr.bf16.mxu0 %v3036_v12  ;;  %v1008_v12 = vld [vmem:[%s3904_s17 + $0x68] sm:$0xff] }
 0x155   : > { %2804 = vmatmul.mubr.bf16.gmra.mrb[8].mxu0 %v3037_v13 }
 0x156   : > { %2807 = vmatprep.mubr.bf16.mxu0 %v3038_v14 }
 0x15d   : > { %2808 = vmatmul.mubr.bf16.gmra.mrb[12].mxu0 %v3039_v15 }
 0x218   : > { %v2797_v17 = vpop.f32.mrb[0].mxu0 }
 0x219   : > { %v941_v19 = vadd.f32 %v2797_v17, %v2572_v16  ;;  %v932_v20 = vpop.f32.mrb[1].mxu0 }
 0x21a   : > { %v933_v22 = vadd.f32 %v2572_v16, %v932_v20  ;;  %v2798_v23 = vpop.f32.mrb[2].mxu0 }
 0x21b   : > { %v3946_v25 = vadd.f32 %v997_v18, %v941_v19  ;;  %v944_v26 = vadd.f32 %v2798_v23, %v2572_v16  ;;  %v935_v27 = vpop.f32.mrb[3].mxu0  ;;  %v3478_v18 = vmov (!%p4241_p4), 0.0  }
 0x21c   : > { %v3949_v29 = vadd.f32 %v995_v21, %v933_v22  ;;  %v936_v30 = vadd.f32 %v2572_v16, %v935_v27  ;;  %1031 = vst [vmem:[#allocation2] sm:$0xff] (!%p4241_p4), %v3478_v18  ;;  %1032 = vst [vmem:[#allocation2 + $0x8] sm:$0xff] (!%p4241_p4), %v3478_v18 }
 0x21d   : > { %v3951_v31 = vadd.f32 %v998_v24, %v944_v26 }
 0x21e   : > { %v1012_v32 = vadd.f32 %v996_v28, %v936_v30  ;;  %1033 = vst [vmem:[#allocation3] sm:$0xff] (!%p4241_p4), %v3949_v29 }
 0x220   : > { %v2801_v33 = vpop.f32.mrb[4].mxu0  ;;  %1034 = vst [vmem:[#allocation3 + $0x8] sm:$0xff] (!%p4241_p4), %v1012_v32 }
 0x221   : > { %v957_v35 = vadd.f32 %v2801_v33, %v2572_v16  ;;  %v948_v36 = vpop.f32.mrb[5].mxu0 }
 0x222   : > { %v949_v38 = vadd.f32 %v2572_v16, %v948_v36  ;;  %v2802_v39 = vpop.f32.mrb[6].mxu0 }
 0x223   : > { %v3956_v41 = vadd.f32 %v1001_v34, %v957_v35  ;;  %v960_v42 = vadd.f32 %v2802_v39, %v2572_v16  ;;  %v951_v43 = vpop.f32.mrb[7].mxu0 }
 0x224   : > { %v3959_v45 = vadd.f32 %v999_v37, %v949_v38  ;;  %v952_v46 = vadd.f32 %v2572_v16, %v951_v43 }
 0x225   : > { %v3961_v47 = vadd.f32 %v1002_v40, %v960_v42 }
 0x226   : > { %v3963_v48 = vadd.f32 %v1000_v44, %v952_v46 }
 0x228   : > { %v2805_v49 = vpop.f32.mrb[8].mxu0 }
 0x229   : > { %v973_v51 = vadd.f32 %v2805_v49, %v2572_v16  ;;  %v964_v52 = vpop.f32.mrb[9].mxu0 }
 0x22a   : > { %v965_v54 = vadd.f32 %v2572_v16, %v964_v52  ;;  %v2806_v55 = vpop.f32.mrb[10].mxu0 }
 0x22b   : > { %v3968_v57 = vadd.f32 %v1005_v50, %v973_v51  ;;  %v976_v58 = vadd.f32 %v2806_v55, %v2572_v16  ;;  %v967_v59 = vpop.f32.mrb[11].mxu0 }
 0x22c   : > { %v1019_v61 = vadd.f32 %v1003_v53, %v965_v54  ;;  %v968_v62 = vadd.f32 %v2572_v16, %v967_v59 }
 0x22d   : > { %v1022_v63 = vadd.f32 %v1006_v56, %v976_v58 }
 0x22e   : > { %v1020_v0 = vadd.f32 %v1004_v60, %v968_v62 }
 0x230   : > { %v2809_v1 = vpop.f32.mrb[12].mxu0  ;;  %1030 = sbr.rel (%p4241_p4) target bundleno = 567 (0x237), region = 132 }
 0x231   : > { %v989_v3 = vadd.f32 %v2809_v1, %v2572_v16  ;;  %v980_v4 = vpop.f32.mrb[13].mxu0 }
 0x232   : > { %v981_v6 = vadd.f32 %v2572_v16, %v980_v4  ;;  %v2810_v7 = vpop.f32.mrb[14].mxu0 }
 0x233   : > { %v1025_v9 = vadd.f32 %v1009_v2, %v989_v3  ;;  %v992_v10 = vadd.f32 %v2810_v7, %v2572_v16  ;;  %v983_v11 = vpop.f32.mrb[15].mxu0 }
 0x234   : > { %v1023_v13 = vadd.f32 %v1007_v5, %v981_v6  ;;  %v984_v14 = vadd.f32 %v2572_v16, %v983_v11 }
 0x235   : > { %v1026_v15 = vadd.f32 %v1010_v8, %v992_v10 }
 0x236   : > { %v1024_v17 = vadd.f32 %v1008_v12, %v984_v14 }
 0x237 PF: > { %v3040_v19 = vld [vmem:[#allocation12] sm:$0xff]   ;;  %v1035_v20 = vpack.c.bf16 %v1012_v32, %v3949_v29  ;;  %v3041_v21 = vld [vmem:[#allocation12 + $0x8] sm:$0xff]   ;;  %v3042_v16 = vld [vmem:[#allocation12 + $0x10] sm:$0xff]   ;;  %v1036_v28 = vpack.c.bf16 %v3951_v31, %v3946_v25  ;;  %v1037_v29 = vpack.c.bf16 %v3963_v48, %v3959_v45  ;;  %v1038_v30 = vpack.c.bf16 %v3961_v47, %v3956_v41  ;;  %p2600_p6 = scmp.ne.s32.totalorder %s3604_s1, 1 }
 0x238   : > { %2811 = vmatprep.subr.bf16.mxu1 %v3040_v19  ;;  %v3043_v22 = vld [vmem:[#allocation12 + $0x18] sm:$0xff]   ;;  %v3044_v23 = vld [vmem:[#allocation12 + $0x20] sm:$0xff]   ;;  %v3045_v24 = vld [vmem:[#allocation12 + $0x28] sm:$0xff]   ;;  %v1039_v32 = vpack.c.bf16 %v1020_v0, %v1019_v61  ;;  %v1040_v33 = vpack.c.bf16 %v1022_v63, %v3968_v57  ;;  %v1041_v34 = vpack.c.bf16 %v1024_v17, %v1023_v13  ;;  %v1042_v35 = vpack.c.bf16 %v1026_v15, %v1025_v9  ;;  %s4242_s29 = sld [smem:[#allocation36_spill]] (!%p2600_p6)  ;;  %s4243_s2 = sld [smem:[#allocation34_spill]] (!%p2600_p6) }
 0x239   : > { %2827 = vmatprep.mubr.bf16.mxu1 %v1035_v20  ;;  %2812 = vmatpush3.bf16.msra.mxu1 %v3040_v19  ;;  %v3046_v26 = vld [vmem:[#allocation12 + $0x30] sm:$0xff]   ;;  %v3047_v27 = vld [vmem:[#allocation12 + $0x38] sm:$0xff]   ;;  %v3479_v25 = vmov 0.0   ;;  %vm3480_vm0 = vmmov 0   ;;  %vm3483_vm1 = vmmov (!%p2600_p6), 0   ;;  %s4244_s13 = sld [smem:[#allocation37_spill]] (!%p2600_p6) }
 0x23a   : > { %2813 = vmatprep.subr.bf16.mxu1 %v3041_v21  ;;  %2843 = vmatprep.subr.bf16.mxu0 %v3479_v25  ;;  %v2590_v31 = vld [vmem:[%s4168_s7] ss:$0 sm:$0xff]  ;;  %s4245_s25 = sld [smem:[#allocation35_spill]] (!%p2600_p6)  ;;  %vm1621_vm2 = vcmask (!%p2600_p6), 130048   ;;  %s4246_s6 = sld [smem:[#allocation39_spill]] (!%p2600_p6) }
 0x23b   : > { %2859 = vmatprep.mubr.msk.bf16.mxu0 %vm3480_vm0, %v3479_v25  ;;  %s4248_s22 = sld [smem:[#allocation42_spill]] (!%p2600_p6) }
 0x23d   : > { %2814 = vmatpush3.bf16.msra.mxu1 %v3041_v21 }
 0x23e   : > { %2815 = vmatprep.subr.bf16.mxu1 %v3042_v16 }
 0x241   : > { %2816 = vmatpush3.bf16.msra.mxu1 %v3042_v16 }
 0x242   : > { %2817 = vmatprep.subr.bf16.mxu1 %v3043_v22 }
 0x245   : > { %2818 = vmatpush3.bf16.msra.mxu1 %v3043_v22 }
 0x246   : > { %2819 = vmatprep.subr.bf16.mxu1 %v3044_v23 }
 0x249   : > { %2820 = vmatpush3.bf16.msra.mxu1 %v3044_v23 }
 0x24a   : > { %2821 = vmatprep.subr.bf16.mxu1 %v3045_v24 }
 0x24d   : > { %2822 = vmatpush3.bf16.msra.mxu1 %v3045_v24 }
 0x24e   : > { %2823 = vmatprep.subr.bf16.mxu1 %v3046_v26 }
 0x251   : > { %2824 = vmatpush3.bf16.msra.mxu1 %v3046_v26 }
 0x252   : > { %2825 = vmatprep.subr.bf16.mxu1 %v3047_v27 }
 0x255   : > { %2826 = vmatpush3.bf16.msra.mxu1 %v3047_v27 }
 0x258   : > { %2828 = vmatmul.mubr.bf16.vlgmr.msra.gmra.mrb[0].mxu1 %v1036_v28 }
 0x259   : > { %2831 = vmatprep.mubr.bf16.mxu1 %v1037_v29  ;;  %v3048_v29 = vld [vmem:[%s3914_s24] sm:$0xff]  }
 0x260   : > { %2832 = vmatmul.mubr.bf16.gmra.mrb[4].mxu1 %v1038_v30  ;;  %v1227_v30 = vld [vmem:[#allocation2] sm:$0xff] }
 0x261   : > { %2835 = vmatprep.mubr.bf16.mxu1 %v1039_v32 }
 0x268   : > { %2836 = vmatmul.mubr.bf16.gmra.mrb[8].mxu1 %v1040_v33  ;;  %v1228_v33 = vld [vmem:[#allocation2 + $0x8] sm:$0xff] }
 0x269   : > { %2839 = vmatprep.mubr.bf16.mxu1 %v1041_v34 }
 0x270   : > { %2840 = vmatmul.mubr.bf16.gmra.mrb[12].mxu1 %v1042_v35 }
 0x32b   : > { %v2829_v36 = vpop.f32.mrb[0].mxu1 }
 0x32c   : > { %v1157_v37 = vadd.f32 %v2829_v36, %v2590_v31  ;;  %v1148_v38 = vpop.f32.mrb[1].mxu1 }
 0x32d   : > { %v1149_v39 = vadd.f32 %v2590_v31, %v1148_v38  ;;  %v2830_v40 = vpop.f32.mrb[2].mxu1  ;;  %v3481_v38 = vmov (!%p2600_p6), 0  }
 0x32e   : > { %v1160_v41 = vadd.f32 %v2830_v40, %v2590_v31  ;;  %v1151_v42 = vpop.f32.mrb[3].mxu1  ;;  %v1213_v44 = vmax.f32 %v1157_v37, 0.0  ;;  %3049 = vset.pattern.permute.xlu0 (!%p2600_p6), %v3481_v38  ;;  %v3050_v40 = vld [vmem:[#allocation13 + $0x40] sm:$0xff] (!%p2600_p6)  }
 0x32f   : > { %v1152_v43 = vadd.f32 %v2590_v31, %v1151_v42  ;;  %v1211_v46 = vmax.f32 %v1149_v39, 0.0  ;;  %v1299_v39 = vld [vmem:[%s4166_s5 + $0x8] sm:$0xff] (!%p2600_p6)  ;;  %v3052_v42 = vld [vmem:[#allocation13 + $0x48] sm:$0xff] (!%p2600_p6)  }
 0x330   : > { %v1214_v45 = vmax.f32 %v1160_v41, 0.0  ;;  %v3051_v41 = vld [vmem:[#allocation13] sm:$0xff] (!%p2600_p6)  }
 0x331   : > { %v1212_v47 = vmax.f32 %v1152_v43, 0.0  ;;  %v3053_v43 = vld [vmem:[#allocation13 + $0x8] sm:$0xff] (!%p2600_p6)  }
 0x332   : > { %v1232_v48 = vpack.c.bf16 %v1214_v45, %v1213_v44  ;;  %v3054_v44 = vld [vmem:[#allocation13 + $0x50] sm:$0xff] (!%p2600_p6)  }
 0x333   : > { %v2833_v49 = vpop.f32.mrb[4].mxu1  ;;  %v1231_v50 = vpack.c.bf16 %v1212_v47, %v1211_v46  ;;  %v1665_v45 = vld [vmem:[%s4172_s11] sm:$0xff] (!%p2600_p6)  ;;  %v3056_v47 = vld [vmem:[#allocation13 + $0x58] sm:$0xff] (!%p2600_p6)  }
 0x334   : > { %v1173_v51 = vadd.f32 %v2833_v49, %v2590_v31  ;;  %v1164_v52 = vpop.f32.mrb[5].mxu1  ;;  %v3055_v46 = vld [vmem:[#allocation13 + $0x10] sm:$0xff] (!%p2600_p6)   ;;  %v3058_v49 = vld [vmem:[#allocation13 + $0x60] sm:$0xff] (!%p2600_p6)  }
 0x335   : > { %v1165_v53 = vadd.f32 %v2590_v31, %v1164_v52  ;;  %v2834_v54 = vpop.f32.mrb[6].mxu1  ;;  %2844 = vmatpush3.bf16.msra.mxu0 %v1231_v50  ;;  %v3059_v50 = vld [vmem:[#allocation13 + $0x20] sm:$0xff] (!%p2600_p6)  }
 0x336   : > { %v1176_v55 = vadd.f32 %v2834_v54, %v2590_v31  ;;  %v1167_v56 = vpop.f32.mrb[7].mxu1  ;;  %2845 = vmatprep.subr.bf16.mxu0 %v3479_v25  ;;  %v1217_v58 = vmax.f32 %v1173_v51, 0.0  ;;  %v3060_v51 = vld [vmem:[#allocation13 + $0x68] sm:$0xff] (!%p2600_p6)   ;;  %v4010_v52 = vld [vmem:[#allocation3] sm:$0xff] (!%p2600_p6) }
 0x337   : > { %v1168_v57 = vadd.f32 %v2590_v31, %v1167_v56  ;;  %v1215_v60 = vmax.f32 %v1165_v53, 0.0  ;;  %v3061_v53 = vld [vmem:[#allocation13 + $0x28] sm:$0xff] (!%p2600_p6)  }
 0x338   : > { %v1218_v59 = vmax.f32 %v1176_v55, 0.0  ;;  %v1295_v54 = vld [vmem:[#allocation3 + $0x8] sm:$0xff] (!%p2600_p6)  ;;  %v3062_v55 = vld [vmem:[#allocation13 + $0x70] sm:$0xff] (!%p2600_p6)  }
 0x339   : > { %v1216_v61 = vmax.f32 %v1168_v57, 0.0  ;;  %2846 = vmatpush3.bf16.msra.mxu0 %v1232_v48  ;;  %v3057_v48 = vld [vmem:[#allocation13 + $0x18] sm:$0xff] (!%p2600_p6)   ;;  %v1313_v56 = vpack.c.bf16 (!%p2600_p6), %v1295_v54, %v4010_v52  ;;  %v3063_v57 = vld [vmem:[#allocation13 + $0x30] sm:$0xff] (!%p2600_p6)  }
 0x33a   : > { %v1234_v62 = vpack.c.bf16 %v1218_v59, %v1217_v58  ;;  %2847 = vmatprep.subr.bf16.mxu0 %v3479_v25  ;;  %v3064_v58 = vld [vmem:[#allocation13 + $0x78] sm:$0xff] (!%p2600_p6)  }
 0x33b   : > { %v1233_v63 = vpack.c.bf16 %v1216_v61, %v1215_v60  ;;  %v2837_v0 = vpop.f32.mrb[8].mxu1  ;;  %v3065_v59 = vld [vmem:[#allocation13 + $0x38] sm:$0xff] (!%p2600_p6)  }
 0x33c   : > { %v1189_v1 = vadd.f32 %v2837_v0, %v2590_v31  ;;  %v1180_v2 = vpop.f32.mrb[9].mxu1 }
 0x33d   : > { %v1181_v3 = vadd.f32 %v2590_v31, %v1180_v2  ;;  %v2838_v4 = vpop.f32.mrb[10].mxu1  ;;  %2848 = vmatpush3.bf16.msra.mxu0 %v1233_v63 }
 0x33e   : > { %v1192_v5 = vadd.f32 %v2838_v4, %v2590_v31  ;;  %v1183_v6 = vpop.f32.mrb[11].mxu1  ;;  %2849 = vmatprep.subr.bf16.mxu0 %v3479_v25  ;;  %v1221_v8 = vmax.f32 %v1189_v1, 0.0  ;;  %v3482_v4 = vmov (!%p2600_p6), 0.0  }
 0x33f   : > { %v1184_v7 = vadd.f32 %v2590_v31, %v1183_v6  ;;  %v1219_v10 = vmax.f32 %v1181_v3, 0.0  ;;  %v3066_v3 = vld [vmem:[%s4242_s29] sm:$0xff] (!%p2600_p6)   ;;  %2863 = vmatprep.subr.bf16.mxu1 (!%p2600_p6), %v3482_v4  ;;  %v3068_v6 = vld [vmem:[%s4242_s29 + $0x10] sm:$0xff] (!%p2600_p6)   ;;  %2879 = vmatprep.mubr.msk.bf16.mxu1 (!%p2600_p6), %vm3483_vm1, %v3482_v4 }
 0x340   : > { %v1222_v9 = vmax.f32 %v1192_v5, 0.0  ;;  %2864 = vmatpush3.bf16.msra.mxu1 (!%p2600_p6), %v3066_v3  ;;  %v3067_v5 = vld [vmem:[%s4242_s29 + $0x8] sm:$0xff] (!%p2600_p6)  }
 0x341   : > { %v1220_v11 = vmax.f32 %v1184_v7, 0.0  ;;  %2850 = vmatpush3.bf16.msra.mxu0 %v1234_v62  ;;  %2865 = vmatprep.subr.bf16.mxu1 (!%p2600_p6), %v3482_v4 }
 0x342   : > { %v1236_v12 = vpack.c.bf16 %v1222_v9, %v1221_v8  ;;  %2851 = vmatprep.subr.bf16.mxu0 %v3479_v25  ;;  %v2601_v9 = vld [vmem:[%s4243_s2] ss:$0 sm:$0xff] (!%p2600_p6)  ;;  %s4247_s2 = sld [smem:[#allocation41_spill]] (!%p2600_p6) }
 0x343   : > { %v1235_v13 = vpack.c.bf16 %v1220_v11, %v1219_v10  ;;  %v2841_v14 = vpop.f32.mrb[12].mxu1 }
 0x344   : > { %v1205_v15 = vadd.f32 %v2841_v14, %v2590_v31  ;;  %v1196_v17 = vpop.f32.mrb[13].mxu1  ;;  %2866 = vmatpush3.bf16.msra.mxu1 (!%p2600_p6), %v3067_v5 }
 0x345   : > { %v1197_v18 = vadd.f32 %v2590_v31, %v1196_v17  ;;  %v2842_v19 = vpop.f32.mrb[14].mxu1  ;;  %2852 = vmatpush3.bf16.msra.mxu0 %v1235_v13  ;;  %2867 = vmatprep.subr.bf16.mxu1 (!%p2600_p6), %v3482_v4 }
 0x346   : > { %v1208_v20 = vadd.f32 %v2842_v19, %v2590_v31  ;;  %v1199_v21 = vpop.f32.mrb[15].mxu1  ;;  %2853 = vmatprep.subr.bf16.mxu0 %v3479_v25  ;;  %v1225_v22 = vmax.f32 %v1205_v15, 0.0 }
 0x347   : > { %v1200_v16 = vadd.f32 %v2590_v31, %v1199_v21  ;;  %v1223_v24 = vmax.f32 %v1197_v18, 0.0  ;;  %v3069_v21 = vld [vmem:[%s4242_s29 + $0x18] sm:$0xff] (!%p2600_p6)  }
 0x348   : > { %v1226_v23 = vmax.f32 %v1208_v20, 0.0  ;;  %2868 = vmatpush3.bf16.msra.mxu1 (!%p2600_p6), %v3068_v6 }
 0x349   : > { %v1224_v26 = vmax.f32 %v1200_v16, 0.0  ;;  %2854 = vmatpush3.bf16.msra.mxu0 %v1236_v12  ;;  %2869 = vmatprep.subr.bf16.mxu1 (!%p2600_p6), %v3482_v4  ;;  %v3070_v16 = vld [vmem:[%s4242_s29 + $0x20] sm:$0xff] (!%p2600_p6)  }
 0x34a   : > { %v1238_v27 = vpack.c.bf16 %v1226_v23, %v1225_v22  ;;  %2855 = vmatprep.subr.bf16.mxu0 %v3479_v25  ;;  %v3071_v22 = vld [vmem:[%s4242_s29 + $0x28] sm:$0xff] (!%p2600_p6)   ;;  %v3072_v23 = vld [vmem:[%s4242_s29 + $0x30] sm:$0xff] (!%p2600_p6)  }
 0x34b   : > { %v1237_v28 = vpack.c.bf16 %v1224_v26, %v1223_v24  ;;  %v3073_v24 = vld [vmem:[%s4242_s29 + $0x38] sm:$0xff] (!%p2600_p6)  }
 0x34c   : > { %2870 = vmatpush3.bf16.msra.mxu1 (!%p2600_p6), %v3069_v21  ;;  %v3101_v21 = vld [vmem:[#allocation16 + $0xc] ss:$16 sps:$4 sm:$0xff] (!%p2600_p6)  }
 0x34d   : > { %2856 = vmatpush3.bf16.msra.mxu0 %v1237_v28  ;;  %2871 = vmatprep.subr.bf16.mxu1 (!%p2600_p6), %v3482_v4 }
 0x34e   : > { %2857 = vmatprep.subr.bf16.mxu0 %v3479_v25  ;;  %v1298_v25 = vld [vmem:[%s4166_s5] sm:$0xff] (!%p2600_p6) }
 0x34f   : > { %1302 = vperm.xlu0 (!%p2600_p6), %3049, %v1298_v25   ;;  %v3076_v25 = vld [vmem:[#allocation15 + $0x48] sm:$0xff] (!%p2600_p6)  }
 0x350   : > { %2872 = vmatpush3.bf16.msra.mxu1 (!%p2600_p6), %v3070_v16  ;;  %v3093_v16 = vld [vmem:[#allocation16 + $0x20] ss:$16 sps:$4 sm:$0xff] (!%p2600_p6)  }
 0x351   : > { %2858 = vmatpush3.bf16.msra.mxu0 %v1238_v27  ;;  %2873 = vmatprep.subr.bf16.mxu1 (!%p2600_p6), %v3482_v4 }
 0x352   : > { %2724 = vmatprep.subr.bf16.mxu0 (!%p2600_p6), %v3050_v40  ;;  %v3078_v40 = vld [vmem:[#allocation15 + $0x50] sm:$0xff] (!%p2600_p6)  }
 0x353   : > { %1307 = vperm.xlu0 (!%p2600_p6), %3049, %v1299_v39   ;;  %v3077_v39 = vld [vmem:[#allocation15 + $0x8] sm:$0xff] (!%p2600_p6)  }
 0x354   : > { %2860 = vmatmul.mubr.bf16.vlgmr.msra.gmra.mrb[16].mxu0 %v3048_v29  ;;  %2874 = vmatpush3.bf16.msra.mxu1 (!%p2600_p6), %v3071_v22  ;;  %v4053_v22 = vld [vmem:[#allocation16 + $0x2c] ss:$16 sps:$4 sm:$0xff] (!%p2600_p6)  }
 0x355   : > { %2725 = vmatpush3.bf16.msra.mxu0 (!%p2600_p6), %v3051_v41  ;;  %1481 = vmatprep.mubr.bf16.mxu0 (!%p2600_p6), %v1313_v56  ;;  %v3079_v41 = vld [vmem:[#allocation15 + $0x10] sm:$0xff] (!%p2600_p6)  }
 0x356   : > { %2726 = vmatprep.subr.bf16.mxu0 (!%p2600_p6), %v3052_v42  ;;  %2875 = vmatprep.subr.bf16.mxu1 (!%p2600_p6), %v3482_v4  ;;  %v3080_v42 = vld [vmem:[#allocation15 + $0x58] sm:$0xff] (!%p2600_p6)  }
 0x357   : > { %1668 = vperm.xlu0 (!%p2600_p6), %3049, %v1665_v45   ;;  %v3083_v45 = vld [vmem:[#allocation15 + $0x20] sm:$0xff] (!%p2600_p6)  }
 0x358   : > { %2876 = vmatpush3.bf16.msra.mxu1 (!%p2600_p6), %v3072_v23  ;;  %v3098_v23 = vld [vmem:[#allocation16 + $0x44] ss:$16 sps:$4 sm:$0xff] (!%p2600_p6)  }
 0x359   : > { %2727 = vmatpush3.bf16.msra.mxu0 (!%p2600_p6), %v3053_v43  ;;  %2877 = vmatprep.subr.bf16.mxu1 (!%p2600_p6), %v3482_v4  ;;  %v3081_v43 = vld [vmem:[#allocation15 + $0x18] sm:$0xff] (!%p2600_p6)  }
 0x35a   : > { %2728 = vmatprep.subr.bf16.mxu0 (!%p2600_p6), %v3054_v44  ;;  %v3082_v44 = vld [vmem:[#allocation15 + $0x60] sm:$0xff] (!%p2600_p6)  }
 0x35c   : > { %2878 = vmatpush3.bf16.msra.mxu1 (!%p2600_p6), %v3073_v24  ;;  %v4056_v24 = vld [vmem:[#allocation16 + $0x28] ss:$16 sps:$4 sm:$0xff] (!%p2600_p6)  }
 0x35d   : > { %2729 = vmatpush3.bf16.msra.mxu0 (!%p2600_p6), %v3055_v46  ;;  %v3084_v46 = vld [vmem:[#allocation15 + $0x68] sm:$0xff] (!%p2600_p6)  }
 0x35e   : > { %2730 = vmatprep.subr.bf16.mxu0 (!%p2600_p6), %v3056_v47  ;;  %v3085_v47 = vld [vmem:[#allocation15 + $0x28] sm:$0xff] (!%p2600_p6)  }
 0x361   : > { %2731 = vmatpush3.bf16.msra.mxu0 (!%p2600_p6), %v3057_v48  ;;  %v3086_v48 = vld [vmem:[#allocation15 + $0x70] sm:$0xff] (!%p2600_p6)  }
 0x362   : > { %2732 = vmatprep.subr.bf16.mxu0 (!%p2600_p6), %v3058_v49  ;;  %v3087_v49 = vld [vmem:[#allocation15 + $0x30] sm:$0xff] (!%p2600_p6)  }
 0x365   : > { %2733 = vmatpush3.bf16.msra.mxu0 (!%p2600_p6), %v3059_v50  ;;  %v2618_v50 = vld [vmem:[%s4244_s13] ss:$0 sm:$0xff] (!%p2600_p6) }
 0x366   : > { %2734 = vmatprep.subr.bf16.mxu0 (!%p2600_p6), %v3060_v51 }
 0x369   : > { %2735 = vmatpush3.bf16.msra.mxu0 (!%p2600_p6), %v3061_v53 }
 0x36a   : > { %2736 = vmatprep.subr.bf16.mxu0 (!%p2600_p6), %v3062_v55 }
 0x36d   : > { %2737 = vmatpush3.bf16.msra.mxu0 (!%p2600_p6), %v3063_v57 }
 0x36e   : > { %2738 = vmatprep.subr.bf16.mxu0 (!%p2600_p6), %v3064_v58 }
 0x371   : > { %2739 = vmatpush3.bf16.msra.mxu0 (!%p2600_p6), %v3065_v59 }
 0x372   : > { %2883 = vmatprep.subr.bf16.mxu0 (!%p2600_p6), %v3482_v4 }
 0x3ce   : > { %v1303_v60 = vpop.permute.xlu0 (!%p2600_p6), %1302 }
 0x3d2   : > { %v1308_v63 = vpop.permute.xlu0 (!%p2600_p6), %1307 }
 0x426   : > { %1293 = sbr.rel (%p2600_p6) target bundleno = 2750 (0xabe), region = 136 }
 0x427   : > { %v1279_v32 = vpop.f32.mrb[16].mxu0 }
 0x428   : > { %v1286_v34 = vadd.f32 %v1279_v32, %v1227_v30  ;;  %v2861_v35 = vpop.f32.mrb[17].mxu0 }
 0x429   : > { %v1282_v31 = vpop.f32.mrb[18].mxu0 }
 0x42a   : > { %1288 = vst [vmem:[#allocation2] sm:$0xff] %v1286_v34  ;;  %v1287_v36 = vadd.f32 %v1282_v31, %v1228_v33  ;;  %v2862_v37 = vpop.f32.mrb[19].mxu0 }
 0x42b   : > { %v3075_v37 = vld [vmem:[#allocation15] sm:$0xff] (!%p2600_p6)  }
 0x42c   : > { %1289 = vst [vmem:[#allocation2 + $0x8] sm:$0xff] %v1287_v36  ;;  %v3074_v36 = vld [vmem:[#allocation15 + $0x40] sm:$0xff] (!%p2600_p6)  }
 0x42d   : > { %2757 = vmatprep.subr.bf16.mxu1 %v3074_v36  ;;  %v3116_v36 = vld [vmem:[#allocation16 + $0xa4] ss:$16 sps:$4 sm:$0xff]  }
 0x431   : > { %v1296_v61 = vld [vmem:[#allocation2] sm:$0xff] }
 0x432   : > { %v1310_v0 = vmul.f32 %v1303_v60, %v1296_v61  ;;  %v1619_v61 = vld [vmem:[%s4245_s25] sm:$0xf] }
 0x433   : > { %v1297_v62 = vld [vmem:[#allocation2 + $0x8] sm:$0xff] }
 0x434   : > { %v1311_v1 = vmul.f32 %v1308_v63, %v1297_v62  ;;  %v3088_v62 = vld [vmem:[#allocation15 + $0x78] sm:$0xff]  }
 0x435   : > { %v3089_v63 = vld [vmem:[#allocation15 + $0x38] sm:$0xff]  }
 0x436   : > { %v1312_v2 = vpack.c.bf16 %v1311_v1, %v1310_v0  ;;  %v1669_v0 = vpop.permute.xlu0 %1668 }
 0x438   : > { %1482 = vmatmul.mubr.bf16.vlgmr.msra.gmra.mrb[0].mxu0 %v1312_v2 }
 0x439   : > { %2885 = vmatprep.mubr.msk.bf16.mxu0 %vm3483_vm1, %v3482_v4 }
 0x50b   : > { %v2740_v7 = vpop.f32.mrb[0].mxu0 }
 0x50c   : > { %v2741_v8 = vpop.f32.mrb[1].mxu0 }
 0x50d   : > { %v2742_v10 = vadd.f32 %v2741_v8, %v2740_v7  ;;  %v2743_v11 = vpop.f32.mrb[2].mxu0  ;;  %v2628_v8 = vld [vmem:[%s4246_s6] ss:$0 sm:$0xff] }
 0x50e   : > { %v2744_v12 = vpop.f32.mrb[3].mxu0 }
 0x50f   : > { %v2745_v13 = vadd.f32 %v2744_v12, %v2743_v11  ;;  %v1484_v14 = vadd.f32 %v2742_v10, %v2601_v9 }
 0x511   : > { %v1487_v15 = vadd.f32 %v2745_v13, %v2601_v9  ;;  %v1490_v17 = vmax.f32 %v1484_v14, 0.0 }
 0x513   : > { %v1491_v18 = vmax.f32 %v1487_v15, 0.0  ;;  %v1492_v19 = vmul.f32 %v1490_v17, %v1490_v17 }
 0x515   : > { %1494 = vadd.xlane.f32.xlu1 %v1492_v19  ;;  %v1493_v20 = vmul.f32 %v1491_v18, %v1491_v18  ;;  %v3095_v19 = vld [vmem:[#allocation16 + $0x24] ss:$16 sps:$4 sm:$0xff]  }
 0x519   : > { %1496 = vadd.xlane.f32.xlu1 %v1493_v20  ;;  %v4051_v20 = vld [vmem:[#allocation16 + $0x8] ss:$16 sps:$4 sm:$0xff]  }
 0x5a2   : > { %v1495_v26 = vpop.xlane.xlu1 %1494 }
 0x5a3   : > { %v1498_v27 = vmax.f32 %v1495_v26, 1e-24  ;;  %v4059_v26 = vld [vmem:[#allocation16 + $0x4c] ss:$16 sps:$4 sm:$0xff]  }
 0x5a5   : > { %3138 = vrsqrt.f32 %v1498_v27  ;;  %v3096_v27 = vld [vmem:[#allocation16 + $0x40] ss:$16 sps:$4 sm:$0xff]  }
 0x5a6   : > { %v1497_v28 = vpop.xlane.xlu1 %1496 }
 0x5a7   : > { %v1499_v29 = vmax.f32 %v1497_v28, 1e-24  ;;  %v3104_v28 = vld [vmem:[#allocation16 + $0x64] ss:$16 sps:$4 sm:$0xff]  }
 0x5a9   : > { %3140 = vrsqrt.f32 %v1499_v29  ;;  %v4062_v29 = vld [vmem:[#allocation16 + $0x48] ss:$16 sps:$4 sm:$0xff]  }
 0x5af   : > { %v3139_v30 = vpop.eup %3138 }
 0x5b0   : > { %v1502_v33 = vmul.f32 %v3139_v30, %v1490_v17  ;;  %v3090_v17 = vld [vmem:[#allocation16] ss:$16 sps:$4 sm:$0xff]   ;;  %v4065_v30 = vld [vmem:[#allocation16 + $0x6c] ss:$16 sps:$4 sm:$0xff]  }
 0x5b2   : > { %v1673_v31 = vpack.c.bf16 %v1502_v33, %v1502_v33 }
 0x5b3   : > { %v3141_v32 = vpop.eup %3140 }
 0x5b4   : > { %v1503_v34 = vmul.f32 %v3141_v32, %v1491_v18  ;;  %v3092_v18 = vld [vmem:[#allocation16 + $0x4] ss:$16 sps:$4 sm:$0xff]   ;;  %v3102_v32 = vld [vmem:[#allocation16 + $0x60] ss:$16 sps:$4 sm:$0xff]  }
 0x5b6   : > { %v1504_v35 = vpack.c.bf16 %v1503_v34, %v1502_v33  ;;  %v3110_v33 = vld [vmem:[#allocation16 + $0x84] ss:$16 sps:$4 sm:$0xff]   ;;  %v4068_v34 = vld [vmem:[#allocation16 + $0x68] ss:$16 sps:$4 sm:$0xff]  }
 0x5b8   : > { %2880 = vmatmul.mubr.bf16.vlgmr.msra.gmra.mrb[0].mxu1 %v1504_v35  ;;  %v3125_v35 = vld [vmem:[#allocation16 + $0x8c] ss:$16 sps:$4 sm:$0xff]  }
 0x5b9   : > { %1841 = vmatprep.mubr.bf16.mxu1 %v1673_v31  ;;  %2758 = vmatpush3.bf16.msra.mxu1 %v3075_v37  ;;  %v3108_v31 = vld [vmem:[#allocation16 + $0x80] ss:$16 sps:$4 sm:$0xff]   ;;  %v3123_v37 = vld [vmem:[#allocation16 + $0x88] ss:$16 sps:$4 sm:$0xff]  }
 0x5ba   : > { %2759 = vmatprep.subr.bf16.mxu1 %v3076_v25  ;;  %v3114_v25 = vld [vmem:[#allocation16 + $0xa0] ss:$16 sps:$4 sm:$0xff]  }
 0x5bd   : > { %2760 = vmatpush3.bf16.msra.mxu1 %v3077_v39  ;;  %v3122_v39 = vld [vmem:[#allocation16 + $0xc4] ss:$16 sps:$4 sm:$0xff]  }
 0x5be   : > { %2761 = vmatprep.subr.bf16.mxu1 %v3078_v40  ;;  %v3120_v40 = vld [vmem:[#allocation16 + $0xc0] ss:$16 sps:$4 sm:$0xff]  }
 0x5c1   : > { %2762 = vmatpush3.bf16.msra.mxu1 %v3079_v41 }
 0x5c2   : > { %2763 = vmatprep.subr.bf16.mxu1 %v3080_v42 }
 0x5c5   : > { %2764 = vmatpush3.bf16.msra.mxu1 %v3081_v43 }
 0x5c6   : > { %2765 = vmatprep.subr.bf16.mxu1 %v3082_v44 }
 0x5c9   : > { %2766 = vmatpush3.bf16.msra.mxu1 %v3083_v45 }
 0x5ca   : > { %2767 = vmatprep.subr.bf16.mxu1 %v3084_v46  ;;  %v3126_v46 = vld [vmem:[#allocation16 + $0xe0] ss:$16 sps:$4 sm:$0xff]  }
 0x5cd   : > { %2768 = vmatpush3.bf16.msra.mxu1 %v3085_v47  ;;  %v3128_v47 = vld [vmem:[#allocation16 + $0xe4] ss:$16 sps:$4 sm:$0xff]  }
 0x5ce   : > { %2769 = vmatprep.subr.bf16.mxu1 %v3086_v48  ;;  %v3129_v48 = vld [vmem:[#allocation16 + $0xa8] ss:$16 sps:$4 sm:$0xff]  }
 0x5d1   : > { %2770 = vmatpush3.bf16.msra.mxu1 %v3087_v49  ;;  %v3131_v49 = vld [vmem:[#allocation16 + $0xac] ss:$16 sps:$4 sm:$0xff]  }
 0x5d2   : > { %2771 = vmatprep.subr.bf16.mxu1 %v3088_v62 }
 0x5d5   : > { %2772 = vmatpush3.bf16.msra.mxu1 %v3089_v63 }
 0x5d6   : > { %2889 = vmatprep.subr.bf16.mxu1 %v3101_v21 }
 0x68b   : > { %v1610_v51 = vpop.f32.mrb[0].mxu1 }
 0x68c   : > { %v1611_v53 = vadd.f32 %v2618_v50, %v1610_v51  ;;  %v2881_v54 = vpop.f32.mrb[1].mxu1  ;;  %v3132_v51 = vld [vmem:[#allocation16 + $0xc8] ss:$16 sps:$4 sm:$0xff]  }
 0x68d   : > { %v1613_v55 = vpop.f32.mrb[2].mxu1  ;;  %v3137_v54 = vld [vmem:[#allocation16 + $0xec] ss:$16 sps:$4 sm:$0xff]  }
 0x68e   : > { %v1614_v56 = vadd.f32 %v2618_v50, %v1613_v55  ;;  %v2882_v57 = vpop.f32.mrb[3].mxu1  ;;  %v1617_v58 = vmax.f32 %v1611_v53, 0.0  ;;  %v3134_v50 = vld [vmem:[#allocation16 + $0xcc] ss:$16 sps:$4 sm:$0xff]   ;;  %v3135_v53 = vld [vmem:[#allocation16 + $0xe8] ss:$16 sps:$4 sm:$0xff]  }
 0x690   : > { %v1618_v59 = vmax.f32 %v1614_v56, 0.0 }
 0x692   : > { %v1620_v60 = vpack.c.bf16 %v1618_v59, %v1617_v58 }
 0x694   : > { %2884 = vmatpush3.bf16.msra.mxu0 %v1620_v60 }
 0x695   : > { %2089 = vmatprep.subr.bf16.mxu0 %v3092_v18 }
 0x697   : > { %2886 = vmatmul.mubr.msk.bf16.vlgmr.msra.gmra.mrb[4].mxu0 %vm1621_vm2, %v1619_v61 }
 0x698   : > { %2121 = vmatprep.mubr.bf16.mxu0 %v3481_v38  ;;  %2090 = vmatpush1.bf16.msra.mxu0 %v3090_v17 }
 0x699   : > { %2091 = vmatprep.subr.bf16.mxu0 %v3095_v19 }
 0x69c   : > { %2092 = vmatpush1.bf16.msra.mxu0 %v3093_v16 }
 0x69d   : > { %2093 = vmatprep.subr.bf16.mxu0 %v3098_v23 }
 0x6a0   : > { %2094 = vmatpush1.bf16.msra.mxu0 %v3096_v27 }
 0x6a1   : > { %2095 = vmatprep.subr.bf16.mxu0 %v3104_v28 }
 0x6a4   : > { %2096 = vmatpush1.bf16.msra.mxu0 %v3102_v32 }
 0x6a5   : > { %2097 = vmatprep.subr.bf16.mxu0 %v3110_v33 }
 0x6a8   : > { %2098 = vmatpush1.bf16.msra.mxu0 %v3108_v31 }
 0x6a9   : > { %2099 = vmatprep.subr.bf16.mxu0 %v3116_v36 }
 0x6ac   : > { %2100 = vmatpush1.bf16.msra.mxu0 %v3114_v25 }
 0x6ad   : > { %2101 = vmatprep.subr.bf16.mxu0 %v3122_v39 }
 0x6b0   : > { %2102 = vmatpush1.bf16.msra.mxu0 %v3120_v40 }
 0x6b1   : > { %2103 = vmatprep.subr.bf16.mxu0 %v3128_v47 }
 0x6b4   : > { %2104 = vmatpush1.bf16.msra.mxu0 %v3126_v46 }
 0x6b5   : > { %2202 = vmatprep.subr.bf16.mxu0 %v3101_v21 }
 0x76a   : > { %v1659_v1 = vpop.f32.mrb[4].mxu0 }
 0x76b   : > { %v1671_v2 = vmul.f32 %v1669_v0, %v1659_v1  ;;  %v2887_v3 = vpop.f32.mrb[5].mxu0 }
 0x76c   : > { %v1662_v4 = vpop.f32.mrb[6].mxu0 }
 0x76d   : > { %v1672_v5 = vpack.c.bf16 %v1671_v2, %v1671_v2  ;;  %v2888_v6 = vpop.f32.mrb[7].mxu0 }
 0x76f   : > { %1842 = vmatmul.mubr.bf16.vlgmr.msra.gmra.mrb[4].mxu1 %v1672_v5 }
 0x770   : > { %2244 = vmatprep.mubr.bf16.mxu1 %v3481_v38  ;;  %2897 = vmatpush1.bf16.msra.mxu1 %v4051_v20 }
 0x771   : > { %2890 = vmatprep.subr.bf16.mxu1 %v4053_v22 }
 0x774   : > { %2898 = vmatpush1.bf16.msra.mxu1 %v4056_v24 }
 0x775   : > { %2891 = vmatprep.subr.bf16.mxu1 %v4059_v26 }
 0x778   : > { %2899 = vmatpush1.bf16.msra.mxu1 %v4062_v29 }
 0x779   : > { %2892 = vmatprep.subr.bf16.mxu1 %v4065_v30 }
 0x77c   : > { %2900 = vmatpush1.bf16.msra.mxu1 %v4068_v34 }
 0x77d   : > { %2893 = vmatprep.subr.bf16.mxu1 %v3125_v35 }
 0x780   : > { %2901 = vmatpush1.bf16.msra.mxu1 %v3123_v37 }
 0x781   : > { %2894 = vmatprep.subr.bf16.mxu1 %v3131_v49 }
 0x784   : > { %2902 = vmatpush1.bf16.msra.mxu1 %v3129_v48 }
 0x785   : > { %2895 = vmatprep.subr.bf16.mxu1 %v3134_v50 }
 0x788   : > { %2903 = vmatpush1.bf16.msra.mxu1 %v3132_v51 }
 0x789   : > { %2896 = vmatprep.subr.bf16.mxu1 %v3137_v54 }
 0x78c   : > { %2904 = vmatpush1.bf16.msra.mxu1 %v3135_v53 }
 0x842   : > { %v2773_v7 = vpop.f32.mrb[4].mxu1 }
 0x843   : > { %v2774_v9 = vpop.f32.mrb[5].mxu1 }
 0x844   : > { %v2775_v10 = vadd.f32 %v2774_v9, %v2773_v7  ;;  %v2776_v11 = vpop.f32.mrb[6].mxu1 }
 0x845   : > { %v2777_v12 = vpop.f32.mrb[7].mxu1 }
 0x846   : > { %v1844_v13 = vadd.f32 %v2775_v10, %v2628_v8 }
 0x848   : > { %v1849_v14 = vmax.f32 %v1844_v13, 0.0 }
 0x84a   : > { %v1850_v15 = vmul.f32 %v1849_v14, %v1849_v14 }
 0x84c   : > { %1851 = vadd.xlane.f32.xlu1 %v1850_v15 }
 0x8d9   : > { %v1852_v41 = vpop.xlane.xlu1 %1851 }
 0x8da   : > { %v1853_v42 = vmax.f32 %v1852_v41, 1e-24 }
 0x8dc   : > { %3142 = vrsqrt.f32 %v1853_v42 }
 0x8e6   : > { %v3143_v43 = vpop.eup %3142 }
 0x8e7   : > { %v1855_v44 = vmul.f32 %v3143_v43, %v1849_v14 }
 0x8e9   : > { %v1856_v45 = vadd.f32 %v1855_v44, %v4010_v52 }
 0x8eb   : > { %1857 = vxpose.xlu0.b32.start.end [1/1] (short) %v1856_v45, 128 }
 0x96b   : > { %v1873_v55 = vpop.trf.xlu0 }
 0x96f   : > { %v1874_v52 = vpop.trf.xlu0 }
 0x970   : > { %v4073_v56 = vpack.c.bf16 %v1874_v52, %v1873_v55 }
 0x972   : > { %2122 = vmatmul.mubr.bf16.vlgmr.msra.gmra.mrb[8].mxu0 %v4073_v56 }
 0x973   : > { %v1875_v57 = vpop.trf.xlu0  ;;  %2203 = vmatpush1.bf16.msra.mxu0 %v4051_v20  ;;  %2131 = vmatprep.mubr.bf16.mxu0 %v3481_v38 }
 0x974   : > { %2204 = vmatprep.subr.bf16.mxu0 %v4053_v22 }
 0x977   : > { %v1876_v58 = vpop.trf.xlu0  ;;  %2205 = vmatpush1.bf16.msra.mxu0 %v4056_v24 }
 0x978   : > { %v1890_v59 = vpack.c.bf16 %v1876_v58, %v1875_v57  ;;  %2206 = vmatprep.subr.bf16.mxu0 %v4059_v26 }
 0x97a   : > { %2132 = vmatmul.mubr.bf16.gmra.mrb[12].mxu0 %v1890_v59  ;;  %2245 = vmatmul.mubr.bf16.vlgmr.msra.gmra.mrb[8].mxu1 %v1890_v59 }
 0x97b   : > { %v1877_v60 = vpop.trf.xlu0  ;;  %2141 = vmatprep.mubr.bf16.mxu0 %v3481_v38  ;;  %2254 = vmatprep.mubr.bf16.mxu1 %v3481_v38 }
 0x97c   : > { %2207 = vmatpush1.bf16.msra.mxu0 %v4062_v29 }
 0x97d   : > { %2208 = vmatprep.subr.bf16.mxu0 %v4065_v30 }
 0x97f   : > { %v1878_v61 = vpop.trf.xlu0 }
 0x980   : > { %v1891_v62 = vpack.c.bf16 %v1878_v61, %v1877_v60  ;;  %2209 = vmatpush1.bf16.msra.mxu0 %v4068_v34 }
 0x981   : > { %2210 = vmatprep.subr.bf16.mxu0 %v3125_v35 }
 0x982   : > { %2142 = vmatmul.mubr.bf16.gmra.mrb[16].mxu0 %v1891_v62  ;;  %2255 = vmatmul.mubr.bf16.gmra.mrb[12].mxu1 %v1891_v62 }
 0x983   : > { %v1879_v63 = vpop.trf.xlu0  ;;  %2151 = vmatprep.mubr.bf16.mxu0 %v3481_v38  ;;  %2264 = vmatprep.mubr.bf16.mxu1 %v3481_v38 }
 0x984   : > { %2211 = vmatpush1.bf16.msra.mxu0 %v3123_v37 }
 0x985   : > { %2212 = vmatprep.subr.bf16.mxu0 %v3131_v49 }
 0x987   : > { %v1880_v0 = vpop.trf.xlu0 }
 0x988   : > { %v1892_v1 = vpack.c.bf16 %v1880_v0, %v1879_v63  ;;  %2213 = vmatpush1.bf16.msra.mxu0 %v3129_v48 }
 0x989   : > { %2214 = vmatprep.subr.bf16.mxu0 %v3134_v50 }
 0x98a   : > { %2152 = vmatmul.mubr.bf16.gmra.mrb[20].mxu0 %v1892_v1  ;;  %2265 = vmatmul.mubr.bf16.gmra.mrb[16].mxu1 %v1892_v1 }
 0x98b   : > { %v1881_v2 = vpop.trf.xlu0  ;;  %2161 = vmatprep.mubr.bf16.mxu0 %v3481_v38  ;;  %2274 = vmatprep.mubr.bf16.mxu1 %v3481_v38 }
 0x98c   : > { %2215 = vmatpush1.bf16.msra.mxu0 %v3132_v51 }
 0x98d   : > { %2216 = vmatprep.subr.bf16.mxu0 %v3137_v54 }
 0x98f   : > { %v1882_v3 = vpop.trf.xlu0 }
 0x990   : > { %v1893_v4 = vpack.c.bf16 %v1882_v3, %v1881_v2  ;;  %2217 = vmatpush1.bf16.msra.mxu0 %v3135_v53 }
 0x992   : > { %2162 = vmatmul.mubr.bf16.gmra.mrb[24].mxu0 %v1893_v4  ;;  %2275 = vmatmul.mubr.bf16.gmra.mrb[20].mxu1 %v1893_v4 }
 0x993   : > { %v1883_v5 = vpop.trf.xlu0  ;;  %2171 = vmatprep.mubr.bf16.mxu0 %v3481_v38  ;;  %2284 = vmatprep.mubr.bf16.mxu1 %v3481_v38 }
 0x997   : > { %v1884_v6 = vpop.trf.xlu0 }
 0x998   : > { %v1894_v7 = vpack.c.bf16 %v1884_v6, %v1883_v5 }
 0x99a   : > { %2172 = vmatmul.mubr.bf16.gmra.mrb[28].mxu0 %v1894_v7  ;;  %2285 = vmatmul.mubr.bf16.gmra.mrb[24].mxu1 %v1894_v7 }
 0x99b   : > { %v1885_v8 = vpop.trf.xlu0  ;;  %2181 = vmatprep.mubr.bf16.mxu0 %v3481_v38  ;;  %2294 = vmatprep.mubr.bf16.mxu1 %v3481_v38 }
 0x99f   : > { %v1886_v9 = vpop.trf.xlu0 }
 0x9a0   : > { %v1895_v10 = vpack.c.bf16 %v1886_v9, %v1885_v8 }
 0x9a2   : > { %2182 = vmatmul.mubr.bf16.gmra.mrb[32].mxu0 %v1895_v10  ;;  %2295 = vmatmul.mubr.bf16.gmra.mrb[28].mxu1 %v1895_v10 }
 0x9a3   : > { %v1887_v11 = vpop.trf.xlu0  ;;  %2191 = vmatprep.mubr.bf16.mxu0 %v3481_v38  ;;  %2304 = vmatprep.mubr.bf16.mxu1 %v3481_v38 }
 0x9a7   : > { %v1888_v12 = vpop.trf.xlu0 }
 0x9a8   : > { %v1896_v13 = vpack.c.bf16 %v1888_v12, %v1887_v11 }
 0x9aa   : > { %2192 = vmatmul.mubr.bf16.gmra.mrb[36].mxu0 %v1896_v13  ;;  %2305 = vmatmul.mubr.bf16.gmra.mrb[32].mxu1 %v1896_v13 }
 0x9ab   : > { %2234 = vmatprep.mubr.bf16.mxu0 %v3481_v38 }
 0x9b2   : > { %2235 = vmatmul.mubr.bf16.vlgmr.msra.gmra.mrb[40].mxu0 %v4073_v56 }
 0xa45   : > { %v2123_v14 = vpop.f32.mrb[8].mxu0 }
 0xa46   : > { %v2125_v15 = vpop.f32.mrb[9].mxu0 }
 0xa47   : > { %v2315_v17 = vmul.f32 %v2125_v15, %v2123_v14  ;;  %v2127_v18 = vpop.f32.mrb[10].mxu0 }
 0xa48   : > { %v2129_v19 = vpop.f32.mrb[11].mxu0 }
 0xa49   : > { %v2316_v20 = vmul.f32 %v2129_v19, %v2127_v18 }
 0xa4b   : > { %v2331_v21 = vadd.f32 %v2316_v20, %v2315_v17 }
 0xa4d   : > { %v2133_v16 = vpop.f32.mrb[12].mxu0  ;;  %v2246_v22 = vpop.f32.mrb[8].mxu1 }
 0xa4e   : > { %v2135_v23 = vpop.f32.mrb[13].mxu0  ;;  %v2248_v24 = vpop.f32.mrb[9].mxu1 }
 0xa4f   : > { %v2317_v26 = vmul.f32 %v2135_v23, %v2133_v16  ;;  %v4098_v27 = vmul.f32 %v2248_v24, %v2246_v22  ;;  %v2137_v28 = vpop.f32.mrb[14].mxu0  ;;  %v2250_v29 = vpop.f32.mrb[10].mxu1 }
 0xa50   : > { %v2139_v30 = vpop.f32.mrb[15].mxu0  ;;  %v2252_v38 = vpop.f32.mrb[11].mxu1 }
 0xa51   : > { %v2332_v32 = vadd.f32 %v2331_v21, %v2317_v26  ;;  %v2318_v33 = vmul.f32 %v2139_v30, %v2137_v28  ;;  %v4100_v34 = vmul.f32 %v2252_v38, %v2250_v29 }
 0xa53   : > { %v2333_v35 = vadd.f32 %v2332_v32, %v2318_v33 }
 0xa55   : > { %v2143_v31 = vpop.f32.mrb[16].mxu0  ;;  %v2256_v36 = vpop.f32.mrb[12].mxu1 }
 0xa56   : > { %v2145_v37 = vpop.f32.mrb[17].mxu0  ;;  %v2258_v25 = vpop.f32.mrb[13].mxu1 }
 0xa57   : > { %v2319_v39 = vmul.f32 %v2145_v37, %v2143_v31  ;;  %v4102_v40 = vmul.f32 %v2258_v25, %v2256_v36  ;;  %v2147_v41 = vpop.f32.mrb[18].mxu0  ;;  %v2260_v42 = vpop.f32.mrb[14].mxu1 }
 0xa58   : > { %v2149_v43 = vpop.f32.mrb[19].mxu0  ;;  %v2262_v44 = vpop.f32.mrb[15].mxu1 }
 0xa59   : > { %v2334_v45 = vadd.f32 %v2333_v35, %v2319_v39  ;;  %v2320_v46 = vmul.f32 %v2149_v43, %v2147_v41  ;;  %v4104_v47 = vmul.f32 %v2262_v44, %v2260_v42 }
 0xa5b   : > { %v2335_v48 = vadd.f32 %v2334_v45, %v2320_v46 }
 0xa5d   : > { %v2153_v49 = vpop.f32.mrb[20].mxu0  ;;  %v2266_v50 = vpop.f32.mrb[16].mxu1 }
 0xa5e   : > { %v2155_v51 = vpop.f32.mrb[21].mxu0  ;;  %v2268_v53 = vpop.f32.mrb[17].mxu1 }
 0xa5f   : > { %v2321_v54 = vmul.f32 %v2155_v51, %v2153_v49  ;;  %v4106_v55 = vmul.f32 %v2268_v53, %v2266_v50  ;;  %v2157_v52 = vpop.f32.mrb[22].mxu0  ;;  %v2270_v56 = vpop.f32.mrb[18].mxu1 }
 0xa60   : > { %v2159_v57 = vpop.f32.mrb[23].mxu0  ;;  %v2272_v58 = vpop.f32.mrb[19].mxu1 }
 0xa61   : > { %v2336_v59 = vadd.f32 %v2335_v48, %v2321_v54  ;;  %v2322_v60 = vmul.f32 %v2159_v57, %v2157_v52  ;;  %v4108_v61 = vmul.f32 %v2272_v58, %v2270_v56 }
 0xa63   : > { %v2337_v62 = vadd.f32 %v2336_v59, %v2322_v60 }
 0xa65   : > { %v2163_v63 = vpop.f32.mrb[24].mxu0  ;;  %v2276_v0 = vpop.f32.mrb[20].mxu1 }
 0xa66   : > { %v2165_v1 = vpop.f32.mrb[25].mxu0  ;;  %v2278_v2 = vpop.f32.mrb[21].mxu1 }
 0xa67   : > { %v2323_v3 = vmul.f32 %v2165_v1, %v2163_v63  ;;  %v4110_v4 = vmul.f32 %v2278_v2, %v2276_v0  ;;  %v2167_v5 = vpop.f32.mrb[26].mxu0  ;;  %v2280_v6 = vpop.f32.mrb[22].mxu1 }
 0xa68   : > { %v2169_v7 = vpop.f32.mrb[27].mxu0  ;;  %v2282_v8 = vpop.f32.mrb[23].mxu1 }
 0xa69   : > { %v2338_v9 = vadd.f32 %v2337_v62, %v2323_v3  ;;  %v2324_v10 = vmul.f32 %v2169_v7, %v2167_v5  ;;  %v2363_v11 = vmul.f32 %v2282_v8, %v2280_v6 }
 0xa6b   : > { %v2339_v12 = vadd.f32 %v2338_v9, %v2324_v10 }
 0xa6d   : > { %v2173_v13 = vpop.f32.mrb[28].mxu0  ;;  %v2286_v14 = vpop.f32.mrb[24].mxu1 }
 0xa6e   : > { %v2175_v15 = vpop.f32.mrb[29].mxu0  ;;  %v2288_v17 = vpop.f32.mrb[25].mxu1 }
 0xa6f   : > { %v2325_v18 = vmul.f32 %v2175_v15, %v2173_v13  ;;  %v2364_v19 = vmul.f32 %v2288_v17, %v2286_v14  ;;  %v2177_v20 = vpop.f32.mrb[30].mxu0  ;;  %v2290_v21 = vpop.f32.mrb[26].mxu1 }
 0xa70   : > { %v2179_v16 = vpop.f32.mrb[31].mxu0  ;;  %v2292_v22 = vpop.f32.mrb[27].mxu1 }
 0xa71   : > { %v2340_v23 = vadd.f32 %v2339_v12, %v2325_v18  ;;  %v2326_v24 = vmul.f32 %v2179_v16, %v2177_v20  ;;  %v2365_v26 = vmul.f32 %v2292_v22, %v2290_v21 }
 0xa73   : > { %v2341_v28 = vadd.f32 %v2340_v23, %v2326_v24 }
 0xa75   : > { %v2183_v29 = vpop.f32.mrb[32].mxu0  ;;  %v2296_v30 = vpop.f32.mrb[28].mxu1 }
 0xa76   : > { %v2185_v38 = vpop.f32.mrb[33].mxu0  ;;  %v2298_v32 = vpop.f32.mrb[29].mxu1 }
 0xa77   : > { %v2327_v33 = vmul.f32 %v2185_v38, %v2183_v29  ;;  %v2366_v35 = vmul.f32 %v2298_v32, %v2296_v30  ;;  %v2187_v31 = vpop.f32.mrb[34].mxu0  ;;  %v2300_v36 = vpop.f32.mrb[30].mxu1 }
 0xa78   : > { %v2189_v37 = vpop.f32.mrb[35].mxu0  ;;  %v2302_v25 = vpop.f32.mrb[31].mxu1 }
 0xa79   : > { %v2342_v39 = vadd.f32 %v2341_v28, %v2327_v33  ;;  %v2328_v41 = vmul.f32 %v2189_v37, %v2187_v31  ;;  %v2367_v42 = vmul.f32 %v2302_v25, %v2300_v36 }
 0xa7b   : > { %v2343_v43 = vadd.f32 %v2342_v39, %v2328_v41 }
 0xa7d   : > { %v2193_v44 = vpop.f32.mrb[36].mxu0  ;;  %v2306_v45 = vpop.f32.mrb[32].mxu1 }
 0xa7e   : > { %v2195_v46 = vpop.f32.mrb[37].mxu0  ;;  %v2308_v48 = vpop.f32.mrb[33].mxu1 }
 0xa7f   : > { %v2329_v49 = vmul.f32 %v2195_v46, %v2193_v44  ;;  %v2368_v50 = vmul.f32 %v2308_v48, %v2306_v45  ;;  %v2197_v51 = vpop.f32.mrb[38].mxu0  ;;  %v2310_v53 = vpop.f32.mrb[34].mxu1 }
 0xa80   : > { %v2199_v54 = vpop.f32.mrb[39].mxu0  ;;  %v2312_v52 = vpop.f32.mrb[35].mxu1 }
 0xa81   : > { %v2344_v56 = vadd.f32 %v2343_v43, %v2329_v49  ;;  %v2330_v57 = vmul.f32 %v2199_v54, %v2197_v51  ;;  %v2369_v58 = vmul.f32 %v2312_v52, %v2310_v53 }
 0xa83   : > { %v2345_v59 = vadd.f32 %v2344_v56, %v2330_v57 }
 0xa85   : > { %v2236_v60 = vpop.f32.mrb[40].mxu0  ;;  %v2346_v14 = vrot.slane %v2345_v59, 4 }
 0xa86   : > { %v2238_v62 = vpop.f32.mrb[41].mxu0 }
 0xa87   : > { %v2354_v63 = vmul.f32 %v2238_v62, %v2236_v60  ;;  %v2240_v0 = vpop.f32.mrb[42].mxu0  ;;  %v2347_v18 = vadd.f32 %v2346_v14, %v2345_v59 }
 0xa88   : > { %v2242_v1 = vpop.f32.mrb[43].mxu0 }
 0xa89   : > { %v2355_v2 = vmul.f32 %v2242_v1, %v2240_v0 }
 0xa8b   : > { %v2370_v3 = vadd.f32 %v2355_v2, %v2354_v63 }
 0xa8d   : > { %v2371_v5 = vadd.f32 %v2370_v3, %v4098_v27  ;;  %v2348_v27 = vrot.slane %v2347_v18, 2 }
 0xa8f   : > { %v2372_v6 = vadd.f32 %v2371_v5, %v4100_v34  ;;  %v2349_v22 = vadd.f32 %v2348_v27, %v2347_v18 }
 0xa91   : > { %v2373_v7 = vadd.f32 %v2372_v6, %v4102_v40 }
 0xa93   : > { %v2374_v8 = vadd.f32 %v2373_v7, %v4104_v47  ;;  %v2350_v47 = vrot.slane %v2349_v22, 1 }
 0xa95   : > { %v2375_v9 = vadd.f32 %v2374_v8, %v4106_v55  ;;  %v2351_v28 = vadd.f32 %v2350_v47, %v2349_v22 }
 0xa97   : > { %v2376_v10 = vadd.f32 %v2375_v9, %v4108_v61 }
 0xa99   : > { %v2377_v12 = vadd.f32 %v2376_v10, %v4110_v4  ;;  %v2352_v4 = vld [vmem:[%s4247_s2] sm:$0x1] }
 0xa9b   : > { %v2378_v13 = vadd.f32 %v2377_v12, %v2363_v11  ;;  %v2391_v11 = vld [vmem:[%s4248_s22] sm:$0x1] }
 0xa9d   : > { %v2379_v15 = vadd.f32 %v2378_v13, %v2364_v19 }
 0xa9f   : > { %v2380_v17 = vadd.f32 %v2379_v15, %v2365_v26  ;;  %v2353_v26 = vadd.f32 %v2352_v4, %v2351_v28 }
 0xaa1   : > { %v2381_v20 = vadd.f32 %v2380_v17, %v2366_v35 }
 0xaa3   : > { %v2382_v21 = vadd.f32 %v2381_v20, %v2367_v42 }
 0xaa5   : > { %v2383_v16 = vadd.f32 %v2382_v21, %v2368_v50 }
 0xaa7   : > { %v2384_v34 = vadd.f32 %v2383_v16, %v2369_v58 }
 0xaa9   : > { %v2385_v40 = vrot.slane %v2384_v34, 4 }
 0xaab   : > { %v2386_v23 = vadd.f32 %v2385_v40, %v2384_v34 }
 0xaad   : > { %v2387_v24 = vrot.slane %v2386_v23, 2 }
 0xaaf   : > { %v2388_v55 = vadd.f32 %v2387_v24, %v2386_v23 }
 0xab1   : > { %v2389_v61 = vrot.slane %v2388_v55, 1 }
 0xab3   : > { %v2390_v19 = vadd.f32 %v2389_v61, %v2388_v55 }
 0xab5   : > { %v2392_v29 = vadd.f32 %v2391_v11, %v2390_v19 }
 0xab7   : > { %v2393_v30 = vsub.f32 %v2392_v29, %v2353_v26 }
 0xab9   : > { %v2394_v38 = vadd.f32 1.0, %v2393_v30 }
 0xabb   : > { %v2395_v32 = vmax.f32 %v2394_v38, 0.0 }
 0xabd   : > { %2396 = vst [vmem:[#allocation18] sm:$0x1] %v2395_v32 }
 0xabe PF: > { %p2972_p13 = scmp.eq.s32.totalorder %s3604_s1, 1  ;;  %s3484_s8 = smov [#allocation18]  }
 0xabf   : > { %s2404_s10 = sshll.u32 %s3484_s8, 4  ;;  %s2405_s10 = int_to_ptr.vmem [resolvable:$true] %s2404_s10 }
 0xac0   : > { %s3374_s14 = scalar_lea.vmem %s2405_s10, 16  ;;  %s3380_s23 = scalar_lea.vmem %s2405_s10, 32 }
 0xac1   : > { %p3375_p0 = scmp.ne.s32.totalorder %s2405_s10, %s3374_s14  ;;  %p3381_p8 = scmp.lt.s32.totalorder %s2405_s10, %s2405_s10 }
 0xac2   : > { %p3382_p3 = scmp.lt.s32.totalorder %s3380_s23, %s3374_s14 }
 0xac3   : > { %p3376_p2 = pnand %p3375_p0, %p2972_p13 }
 0xac4   : > { %p3383_p9 = por %p3382_p3, %p3381_p8 }
 0xac5   : > { %p3377_p12 = pneg %p3376_p2 }
 0xac7   : > { %p3384_p11 = pnand %p3383_p9, %p3377_p12 }
 0xac9   : > { %3387 = shalt.err (!%p3384_p11)
}
 0xaca   : > { %s4249_s26 = sld [smem:[#allocation43_spill]] }
 0xad0   : > { %s3388_s21 = scalar_lea.hbm %s4249_s26, 16 }
 0xad1   : > { %p3389_p7 = scmp.ne.s32.totalorder %s4249_s26, %s3388_s21  ;;  %p3394_p5 = scmp.lt.u32.totalorder %s3388_s21, %s4249_s26 }
 0xad3   : > { %p3390_p1 = pnand %p3389_p7, %p2972_p13 }
 0xad5   : > { %p3391_p10 = pneg %p3390_p1 }
 0xad7   : > { %p3396_p4 = pnand %p3394_p5, %p3391_p10 }
 0xad9   : > { %3399 = shalt.err (!%p3396_p4)
}
 0xada   : > { %2932 = dma.vmem_to_hbm [thread:$0]  (%p2972_p13), %s2405_s10, 16, %s4249_s26, [#allocation6]  }
 0xadb   : > { %3445 = dma.done.wait (%p2972_p13), [#allocation6], 16  }
 0xadc   : > { %3447 = vsyncadd (%p2972_p13), [#allocation6], 4294967280 }
 0xadd PF: > { %s4250_s28 = sld [smem:[#allocation27_spill]]  ;;  %p38_p6 = scmp.ge.s32.totalorder %s3755_s9, 4  }
 0xade   : > { %s4251_s0 = smov %s3454_s30  ;;  %s4252_s30 = smov %s3458_s20 }
 0xadf   : > { %s4254_s21 = smov %s3755_s9  ;;  %40 = sbr.rel (!%p38_p6) target bundleno = 27 (0x1b), region = 187 }
 0xae3   : > { %s4253_s20 = smov %s4250_s28 }
 0xae6   :  { %2417 = vsyncpa [#allocation5], 1 }
 0xae7   :  { %2419 = vsyncpa [#allocation5 + $0x1], 1 }
 0xae8   :  { %2420 = vsyncpa [#allocation8], 1 }
 0xae9   :  { %2422 = vsyncpa [#allocation8 + $0x1], 1 }
 0xaea   :  { %2423 = vsyncpa [#allocation11], 1 }
 0xaeb   :  { %2425 = vsyncpa [#allocation11 + $0x1], 1 }
 0xaec   :  { %2426 = vsyncpa [#allocation14], 1 }
 0xaed   :  { %2427 = vsyncpa [#allocation17], 1 }
 0xaee   :  { %2428 = vsyncpa [#allocation6], 1 }
 0xaef   :  { %2430 = vsyncpa [#allocation6 + $0x1], 1 }

</bundles_post_ra>
